<compile_context>
chip_gen: v5e
topology: v5e:2x2
jax: 0.10.0
libtpu: 0.0.40
codegen_flags: <defaults>
</compile_context>

<pallas_src>
import jax
import jax.numpy as jnp
from jax.experimental import pallas as pl
from jax.experimental.pallas import tpu as pltpu


# ----------------------------- Pallas kernels ------------------------------

def _conv_bn_relu_pool_kernel(patch_ref, w_ref, shift_ref, out_ref):
    # patch_ref : (1, CKp, B*4*Pp) bf16  pool-grouped im2col patches, B samples
    #                                    concatenated on the lane axis
    # w_ref     : (Cout, CKp)      bf16  conv weight with BN scale folded in
    # shift_ref : (Cout, 1)        f32   folded conv bias + BN mean/beta
    # out_ref   : (B, Cout, Pp)    f32   pooled activations, channel-major
    B, Cout, pp = out_ref.shape

    # Single MXU matmul covers all B samples and all 4 pool offsets.
    y = jnp.dot(w_ref[...], patch_ref[0],
                preferred_element_type=jnp.float32)          # (Cout, B*4*Pp)
    shift = shift_ref[...]                                    # hoisted load

    for b in range(B):  # B is small & static -> unrolled, 128-aligned slices
        yb = y[:, b * 4 * pp:(b + 1) * 4 * pp]
        # 2x2 max-pool = elementwise max over four 128-aligned lane slices,
        # done BEFORE shift+ReLU (exact: shift is per-channel constant).
        m = jnp.maximum(jnp.maximum(yb[:, 0 * pp:1 * pp], yb[:, 1 * pp:2 * pp]),
                        jnp.maximum(yb[:, 2 * pp:3 * pp], yb[:, 3 * pp:4 * pp]))
        out_ref[b] = jnp.maximum(m + shift, 0.0)              # BN shift + ReLU


def _fc_kernel(x_ref, w_ref, b_ref, out_ref):
    # x_ref: (Bn, Dp), w_ref: (Dp, Cpad), b_ref: (1, Cpad), out_ref: (Bn, Cpad)
    out_ref[...] = (jnp.dot(x_ref[...], w_ref[...],
                            preferred_element_type=jnp.float32) + b_ref[...])


# ------------------------------- JAX glue ----------------------------------

def _round_up(x, m):
    return ((x + m - 1) // m) * m


def _im2col_pool_grouped(x_nchw, K, pad, p_pad, ck_pad):
    """(N,Cin,H,W) -> (N, ck_pad, 4, p_pad) pool-grouped 'flipped' patches.

    Row index is (cin, kh, kw) (zero-padded up to ck_pad); third axis is the
    2x2 pool-window offset q = dy*2 + dx; last axis is the pooled position
    p = ph*(W//2) + pw (zero-padded up to p_pad).
    """
    N, C, H, W = x_nchw.shape
    Hp, Wp = H // 2, W // 2
    P = Hp * Wp
    CK = C * K * K
    xp = jnp.pad(x_nchw, ((0, 0), (0, 0), (pad, pad), (pad, pad)))
    cols = [xp[:, :, kh:kh + H, kw:kw + W]
            for kh in range(K) for kw in range(K)]            # each (N,C,H,W)
    p = jnp.stack(cols, axis=2)                               # (N,C,KK,H,W)
    p = p.reshape(N, C, K * K, Hp, 2, Wp, 2)
    p = p.transpose(0, 1, 2, 4, 6, 3, 5)                      # (N,C,KK,dy,dx,Hp,Wp)
    p = p.reshape(N, CK, 4, P)
    p = jnp.pad(p, ((0, 0), (0, ck_pad - CK), (0, 0), (0, p_pad - P)))
    return p                                                  # (N, ck_pad, 4, p_pad)


def conv_bn_relu_pool(x_nchw, w_pad, shift, *, K=5, pad=2, block_b=8):
    """Fused Conv2d(k=5,s=1,p=2) + BN(eval, scale pre-folded) + ReLU + MaxPool(2,2).

    x_nchw : (N, Cin, H, W) f32.   w_pad : (Cout, CKp) bf16 (scale folded).
    Returns ((N, Cout, P_pad) f32, (Hp, Wp)); only the first Hp*Wp lanes of
    the last axis are valid.  Output is channel-major (NCHW-flattened).
    """
    N, Cin, H, W = x_nchw.shape
    assert H % 2 == 0 and W % 2 == 0
    Cout, CKp = w_pad.shape
    Hp, Wp = H // 2, W // 2
    P = Hp * Wp
    Pp = _round_up(P, 128)

    # Per-step batch: big blocks to amortize grid-step overhead, but keep
    # >=2 grid steps when possible so megacore / 2-TC chips stay balanced.
    if N >= 2 * block_b:
        B = block_b
    elif N >= 2:
        B = max(1, N // 2)
    else:
        B = 1
    NB = _round_up(N, B)

    patches = _im2col_pool_grouped(x_nchw, K, pad, Pp, CKp)   # (N, CKp, 4, Pp)
    if NB > N:
        patches = jnp.pad(patches, ((0, NB - N), (0, 0), (0, 0), (0, 0)))
    # Concatenate B samples on the lane axis: (NB//B, CKp, B*4*Pp), bf16.
    patches = patches.reshape(NB // B, B, CKp, 4, Pp)
    patches = patches.transpose(0, 2, 1, 3, 4).reshape(NB // B, CKp, B * 4 * Pp)
    patches = patches.astype(jnp.bfloat16)

    lanes = B * 4 * Pp
    out = pl.pallas_call(
        _conv_bn_relu_pool_kernel,
        out_shape=jax.ShapeDtypeStruct((NB, Cout, Pp), jnp.float32),
        grid=(NB // B,),
        in_specs=[
            pl.BlockSpec((1, CKp, lanes), lambda i: (i, 0, 0)),
            pl.BlockSpec((Cout, CKp), lambda i: (0, 0)),
            pl.BlockSpec((Cout, 1), lambda i: (0, 0)),
        ],
        out_specs=pl.BlockSpec((B, Cout, Pp), lambda i: (i, 0, 0)),
        compiler_params=pltpu.CompilerParams(
            dimension_semantics=("parallel",)),
    )(patches, w_pad, shift)

    return out[:N], (Hp, Wp)


def linear(x, w_pad, b_pad, *, block_n=128):
    """x: (N, D) @ w_pad: (Dp, Cpad) + b_pad -> (N, Cpad), tiled over N."""
    N, D = x.shape
    Dp, Cpad = w_pad.shape
    if D < Dp:
        x = jnp.pad(x, ((0, 0), (0, Dp - D)))
    Bn = min(block_n, _round_up(N, 8))
    NB = _round_up(N, Bn)
    if NB > N:
        x = jnp.pad(x, ((0, NB - N), (0, 0)))

    out = pl.pallas_call(
        _fc_kernel,
        out_shape=jax.ShapeDtypeStruct((NB, Cpad), jnp.float32),
        grid=(NB // Bn,),
        in_specs=[
            pl.BlockSpec((Bn, Dp), lambda i: (i, 0)),
            pl.BlockSpec((Dp, Cpad), lambda i: (0, 0)),
            pl.BlockSpec((1, Cpad), lambda i: (0, 0)),
        ],
        out_specs=pl.BlockSpec((Bn, Cpad), lambda i: (i, 0)),
        compiler_params=pltpu.CompilerParams(
            dimension_semantics=("parallel",)),
    )(x, w_pad, b_pad)
    return out[:N]


# ---------------------- one-time parameter preparation ---------------------

def _prep_conv_params(w_oihw, conv_b, gamma, beta, mean, var, eps):
    """Fold eval-mode BN into the conv: scale into the weight, shift separate.
    Weight is reshaped OIHW->(Cout, Cin*K*K), zero-padded to a sublane
    multiple and cast to bf16."""
    Cout, Cin, K, _ = w_oihw.shape
    scale = gamma / jnp.sqrt(var + eps)
    shift = (conv_b - mean) * scale + beta
    CK = Cin * K * K
    CKp = _round_up(CK, 8)
    w2d = w_oihw.reshape(Cout, CK) * scale[:, None]
    w2d = jnp.pad(w2d, ((0, 0), (0, CKp - CK))).astype(jnp.bfloat16)
    return w2d, shift.reshape(Cout, 1).astype(jnp.float32)


def _prep_fc_params(fc_w, fc_b, lane=128):
    """Torch fc weight (ncls, D) -> (Dp, ncls_pad) with D and ncls padded to
    lane multiples (compact flatten: D = c_feat * 7 * 7 valid features)."""
    ncls, D = fc_w.shape
    ncls_pad = _round_up(ncls, lane)
    Dp = _round_up(D, lane)
    w = jnp.pad(fc_w, ((0, ncls_pad - ncls), (0, Dp - D))).T   # (Dp, ncls_pad)
    b = jnp.pad(fc_b, (0, ncls_pad - ncls)).reshape(1, ncls_pad)
    return w.astype(jnp.float32), b.astype(jnp.float32)


def prepare_params(p, eps=1e-5):
    """One-time prep (call once, outside the per-batch forward)."""
    w1, sh1 = _prep_conv_params(p["conv1_w"], p["conv1_b"], p["bn1_gamma"],
                                p["bn1_beta"], p["bn1_mean"], p["bn1_var"], eps)
    w2, sh2 = _prep_conv_params(p["conv2_w"], p["conv2_b"], p["bn2_gamma"],
                                p["bn2_beta"], p["bn2_mean"], p["bn2_var"], eps)
    fc_w, fc_b = _prep_fc_params(p["fc_w"], p["fc_b"])
    return {"w1": w1, "sh1": sh1, "w2": w2, "sh2": sh2,
            "fc_w": fc_w, "fc_b": fc_b}


# ----------------------------- model assembly ------------------------------

def init_params(key, num_classes=10):
    ks = jax.random.split(key, 14)
    nrm = lambda k, s, scale=0.1: scale * jax.random.normal(k, s, jnp.float32)
    return {
        "conv1_w": nrm(ks[0], (16, 1, 5, 5)),
        "conv1_b": nrm(ks[1], (16,)),
        "bn1_gamma": 1.0 + nrm(ks[2], (16,)),
        "bn1_beta": nrm(ks[3], (16,)),
        "bn1_mean": nrm(ks[4], (16,)),
        "bn1_var": 1.0 + jnp.abs(nrm(ks[5], (16,))),
        "conv2_w": nrm(ks[6], (32, 16, 5, 5)),
        "conv2_b": nrm(ks[7], (32,)),
        "bn2_gamma": 1.0 + nrm(ks[8], (32,)),
        "bn2_beta": nrm(ks[9], (32,)),
        "bn2_mean": nrm(ks[10], (32,)),
        "bn2_var": 1.0 + jnp.abs(nrm(ks[11], (32,))),
        "fc_w": nrm(ks[12], (num_classes, 7 * 7 * 32)),   # torch flatten (c,h,w)
        "fc_b": nrm(ks[13], (num_classes,)),
    }


def convnet_forward(x, pp, num_classes=10):
    N = x.shape[0]

    # layer1: fused conv+bn+relu+pool -> (N, 16, P_pad), channel-major.
    out1, (hp1, wp1) = conv_bn_relu_pool(x, pp["w1"], pp["sh1"])
    c1 = out1.shape[1]
    # layer2 input: drop lane padding, restore spatial dims (no transpose —
    # the kernel output is already channel-major / NCHW-flattened).
    x2 = out1[:, :, :hp1 * wp1].reshape(N, c1, hp1, wp1)          # (N,16,14,14)

    out2, (hp2, wp2) = conv_bn_relu_pool(x2, pp["w2"], pp["sh2"])  # (N,32,128)
    c2 = out2.shape[1]

    # fc: COMPACT flatten of only the valid pool positions (torch (c,h,w)
    # order); padded lanes of the conv output are dropped, not cancelled.
    flat = out2[:, :, :hp2 * wp2].reshape(N, c2 * hp2 * wp2)       # (N, 1568)
    logits = linear(flat, pp["fc_w"], pp["fc_b"])                  # (N, 128)
    return logits[:, :num_classes]


# ------------------------------- reference ---------------------------------

def torch_reference(x, p, eps=1e-5):
    def conv(x, w, b):
        y = jax.lax.conv_general_dilated(
            x, w, window_strides=(1, 1), padding=((2, 2), (2, 2)),
            dimension_numbers=("NCHW", "OIHW", "NCHW"),
            precision=jax.lax.Precision.HIGHEST)
        return y + b.reshape(1, -1, 1, 1)

    def bn(x, g, be, m, v):
        c = lambda a: a.reshape(1, -1, 1, 1)
        return (x - c(m)) / jnp.sqrt(c(v) + eps) * c(g) + c(be)

    def pool(x):
        N, C, H, W = x.shape
        return x.reshape(N, C, H // 2, 2, W // 2, 2).max(axis=(3, 5))

    out = pool(jnp.maximum(bn(conv(x, p["conv1_w"], p["conv1_b"]),
                              p["bn1_gamma"], p["bn1_beta"],
                              p["bn1_mean"], p["bn1_var"]), 0.0))
    out = pool(jnp.maximum(bn(conv(out, p["conv2_w"], p["conv2_b"]),
                              p["bn2_gamma"], p["bn2_beta"],
                              p["bn2_mean"], p["bn2_var"]), 0.0))
    flat = out.reshape(out.shape[0], -1)
    return flat @ p["fc_w"].T + p["fc_b"]


if __name__ == "__main__":
    key = jax.random.PRNGKey(0)
    kx, kp = jax.random.split(key)
    x = jax.random.normal(kx, (2, 1, 28, 28), jnp.float32)   # MNIST-shaped input
    params = init_params(kp, num_classes=10)

    prepped = prepare_params(params)                         # one-time prep
    fwd = jax.jit(convnet_forward, static_argnames=("num_classes",))
    out = fwd(x, prepped)
    out = jax.block_until_ready(out)
    assert out.shape == (2, 10), out.shape

    ref = torch_reference(x, params)
    max_err = float(jnp.max(jnp.abs(out - ref)))
    # bf16 MXU operands (f32 accumulation) -> relaxed-but-tight tolerance.
    assert jnp.allclose(out, ref, rtol=2e-2, atol=2e-2), max_err

    print("KERNEL_OK")
</pallas_src>

<mosaic_0001>
module attributes {stable_mosaic.version = 11 : i64} {
  func.func @_conv_bn_relu_pool_kernel(%arg0: i32, %arg1: memref<1x32x1024xbf16, #tpu.memory_space<vmem>>, %arg2: memref<16x32xbf16, #tpu.memory_space<vmem>>, %arg3: memref<16x1xf32, #tpu.memory_space<vmem>>, %arg4: memref<1x16x256xf32, #tpu.memory_space<vmem>>) attributes {dimension_semantics = [#tpu.dimension_semantics<parallel>], iteration_bounds = array<i64: 2>, scalar_prefetch = 0 : i64, scratch_operands = 0 : i64, tpu.core_type = #tpu.core_type<tc>, window_params = [{transform_indices = @transform_0, window_bounds = array<i64: 1, 32, 1024>}, {pipeline_mode = #tpu.pipeline_mode<synchronous>, transform_indices = @transform_1, window_bounds = array<i64: 16, 32>}, {pipeline_mode = #tpu.pipeline_mode<synchronous>, transform_indices = @transform_2, window_bounds = array<i64: 16, 1>}, {transform_indices = @transform_3, window_bounds = array<i64: 1, 16, 256>}]} {
    %c0 = arith.constant 0 : index
    %c0_0 = arith.constant 0 : index
    %0 = vector.load %arg2[%c0, %c0_0] : memref<16x32xbf16, #tpu.memory_space<vmem>>, vector<16x32xbf16>
    %c0_1 = arith.constant 0 : index
    %c0_2 = arith.constant 0 : index
    %c0_3 = arith.constant 0 : index
    %1 = vector.load %arg1[%c0_1, %c0_2, %c0_3] : memref<1x32x1024xbf16, #tpu.memory_space<vmem>>, vector<1x32x1024xbf16>
    %2 = vector.shape_cast %1 : vector<1x32x1024xbf16> to vector<32x1024xbf16>
    %cst = arith.constant dense<0.000000e+00> : vector<16x1024xf32>
    %3 = tpu.matmul %0, %2, %cst {dimension_numbers = #tpu.dot_dimension_numbers<[1], [0], [0], [1], [0, 0, 1, 1], [], []>} : vector<16x32xbf16>, vector<32x1024xbf16>, vector<16x1024xf32> -> vector<16x1024xf32>
    %c0_4 = arith.constant 0 : index
    %c0_5 = arith.constant 0 : index
    %4 = vector.load %arg3[%c0_4, %c0_5] : memref<16x1xf32, #tpu.memory_space<vmem>>, vector<16x1xf32>
    %5 = vector.extract_strided_slice %3 {offsets = [0, 0], sizes = [16, 256], strides = [1, 1]} : vector<16x1024xf32> to vector<16x256xf32>
    %6 = vector.extract_strided_slice %3 {offsets = [0, 256], sizes = [16, 256], strides = [1, 1]} : vector<16x1024xf32> to vector<16x256xf32>
    %7 = arith.maximumf %5, %6 : vector<16x256xf32>
    %8 = vector.extract_strided_slice %3 {offsets = [0, 512], sizes = [16, 256], strides = [1, 1]} : vector<16x1024xf32> to vector<16x256xf32>
    %9 = vector.extract_strided_slice %3 {offsets = [0, 768], sizes = [16, 256], strides = [1, 1]} : vector<16x1024xf32> to vector<16x256xf32>
    %10 = arith.maximumf %8, %9 : vector<16x256xf32>
    %11 = arith.maximumf %7, %10 : vector<16x256xf32>
    %12 = vector.broadcast %4 : vector<16x1xf32> to vector<16x256xf32>
    %13 = arith.addf %11, %12 : vector<16x256xf32>
    %cst_6 = arith.constant 0.000000e+00 : f32
    %14 = vector.broadcast %cst_6 : f32 to vector<16x256xf32>
    %15 = arith.maximumf %13, %14 : vector<16x256xf32>
    %c0_7 = arith.constant 0 : index
    %c0_8 = arith.constant 0 : index
    %c0_9 = arith.constant 0 : index
    %16 = vector.load %arg4[%c0_7, %c0_8, %c0_9] : memref<1x16x256xf32, #tpu.memory_space<vmem>>, vector<1x16x256xf32>
    %17 = vector.shape_cast %16 : vector<1x16x256xf32> to vector<16x256xf32>
    %18 = vector.shape_cast %15 : vector<16x256xf32> to vector<1x16x256xf32>
    tpu.vector_store %arg4[%c0_7, %c0_8, %c0_9], %18 {strides = array<i32>} : memref<1x16x256xf32, #tpu.memory_space<vmem>>, vector<1x16x256xf32>,
    return
  }
  func.func @transform_0(%arg0: i32) -> (i32, i32, i32) {
    %c0_i32 = arith.constant 0 : i32
    %c0_i32_0 = arith.constant 0 : i32
    %c0_i32_1 = arith.constant 0 : i32
    return %arg0, %c0_i32, %c0_i32_0 : i32, i32, i32
  }
  func.func @transform_1(%arg0: i32) -> (i32, i32) {
    %c0_i32 = arith.constant 0 : i32
    %c0_i32_0 = arith.constant 0 : i32
    %c0_i32_1 = arith.constant 0 : i32
    return %c0_i32, %c0_i32_0 : i32, i32
  }
  func.func @transform_2(%arg0: i32) -> (i32, i32) {
    %c0_i32 = arith.constant 0 : i32
    %c0_i32_0 = arith.constant 0 : i32
    %c0_i32_1 = arith.constant 0 : i32
    return %c0_i32, %c0_i32_0 : i32, i32
  }
  func.func @transform_3(%arg0: i32) -> (i32, i32, i32) {
    %c0_i32 = arith.constant 0 : i32
    %c0_i32_0 = arith.constant 0 : i32
    %c0_i32_1 = arith.constant 0 : i32
    return %arg0, %c0_i32, %c0_i32_0 : i32, i32, i32
  }
}

module attributes {stable_mosaic.version = 11 : i64} {
  func.func @_conv_bn_relu_pool_kernel(%arg0: i32, %arg1: memref<1x400x512xbf16, #tpu.memory_space<vmem>>, %arg2: memref<32x400xbf16, #tpu.memory_space<vmem>>, %arg3: memref<32x1xf32, #tpu.memory_space<vmem>>, %arg4: memref<1x32x128xf32, #tpu.memory_space<vmem>>) attributes {dimension_semantics = [#tpu.dimension_semantics<parallel>], iteration_bounds = array<i64: 2>, scalar_prefetch = 0 : i64, scratch_operands = 0 : i64, tpu.core_type = #tpu.core_type<tc>, window_params = [{transform_indices = @transform_0, window_bounds = array<i64: 1, 400, 512>}, {pipeline_mode = #tpu.pipeline_mode<synchronous>, transform_indices = @transform_1, window_bounds = array<i64: 32, 400>}, {pipeline_mode = #tpu.pipeline_mode<synchronous>, transform_indices = @transform_2, window_bounds = array<i64: 32, 1>}, {transform_indices = @transform_3, window_bounds = array<i64: 1, 32, 128>}]} {
    %c0 = arith.constant 0 : index
    %c0_0 = arith.constant 0 : index
    %0 = vector.load %arg2[%c0, %c0_0] : memref<32x400xbf16, #tpu.memory_space<vmem>>, vector<32x400xbf16>
    %c0_1 = arith.constant 0 : index
    %c0_2 = arith.constant 0 : index
    %c0_3 = arith.constant 0 : index
    %1 = vector.load %arg1[%c0_1, %c0_2, %c0_3] : memref<1x400x512xbf16, #tpu.memory_space<vmem>>, vector<1x400x512xbf16>
    %2 = vector.shape_cast %1 : vector<1x400x512xbf16> to vector<400x512xbf16>
    %cst = arith.constant dense<0.000000e+00> : vector<32x512xf32>
    %3 = tpu.matmul %0, %2, %cst {dimension_numbers = #tpu.dot_dimension_numbers<[1], [0], [0], [1], [0, 0, 1, 1], [], []>} : vector<32x400xbf16>, vector<400x512xbf16>, vector<32x512xf32> -> vector<32x512xf32>
    %c0_4 = arith.constant 0 : index
    %c0_5 = arith.constant 0 : index
    %4 = vector.load %arg3[%c0_4, %c0_5] : memref<32x1xf32, #tpu.memory_space<vmem>>, vector<32x1xf32>
    %5 = vector.extract_strided_slice %3 {offsets = [0, 0], sizes = [32, 128], strides = [1, 1]} : vector<32x512xf32> to vector<32x128xf32>
    %6 = vector.extract_strided_slice %3 {offsets = [0, 128], sizes = [32, 128], strides = [1, 1]} : vector<32x512xf32> to vector<32x128xf32>
    %7 = arith.maximumf %5, %6 : vector<32x128xf32>
    %8 = vector.extract_strided_slice %3 {offsets = [0, 256], sizes = [32, 128], strides = [1, 1]} : vector<32x512xf32> to vector<32x128xf32>
    %9 = vector.extract_strided_slice %3 {offsets = [0, 384], sizes = [32, 128], strides = [1, 1]} : vector<32x512xf32> to vector<32x128xf32>
    %10 = arith.maximumf %8, %9 : vector<32x128xf32>
    %11 = arith.maximumf %7, %10 : vector<32x128xf32>
    %12 = vector.broadcast %4 : vector<32x1xf32> to vector<32x128xf32>
    %13 = arith.addf %11, %12 : vector<32x128xf32>
    %cst_6 = arith.constant 0.000000e+00 : f32
    %14 = vector.broadcast %cst_6 : f32 to vector<32x128xf32>
    %15 = arith.maximumf %13, %14 : vector<32x128xf32>
    %c0_7 = arith.constant 0 : index
    %c0_8 = arith.constant 0 : index
    %c0_9 = arith.constant 0 : index
    %16 = vector.load %arg4[%c0_7, %c0_8, %c0_9] : memref<1x32x128xf32, #tpu.memory_space<vmem>>, vector<1x32x128xf32>
    %17 = vector.shape_cast %16 : vector<1x32x128xf32> to vector<32x128xf32>
    %18 = vector.shape_cast %15 : vector<32x128xf32> to vector<1x32x128xf32>
    tpu.vector_store %arg4[%c0_7, %c0_8, %c0_9], %18 {strides = array<i32>} : memref<1x32x128xf32, #tpu.memory_space<vmem>>, vector<1x32x128xf32>,
    return
  }
  func.func @transform_0(%arg0: i32) -> (i32, i32, i32) {
    %c0_i32 = arith.constant 0 : i32
    %c0_i32_0 = arith.constant 0 : i32
    %c0_i32_1 = arith.constant 0 : i32
    return %arg0, %c0_i32, %c0_i32_0 : i32, i32, i32
  }
  func.func @transform_1(%arg0: i32) -> (i32, i32) {
    %c0_i32 = arith.constant 0 : i32
    %c0_i32_0 = arith.constant 0 : i32
    %c0_i32_1 = arith.constant 0 : i32
    return %c0_i32, %c0_i32_0 : i32, i32
  }
  func.func @transform_2(%arg0: i32) -> (i32, i32) {
    %c0_i32 = arith.constant 0 : i32
    %c0_i32_0 = arith.constant 0 : i32
    %c0_i32_1 = arith.constant 0 : i32
    return %c0_i32, %c0_i32_0 : i32, i32
  }
  func.func @transform_3(%arg0: i32) -> (i32, i32, i32) {
    %c0_i32 = arith.constant 0 : i32
    %c0_i32_0 = arith.constant 0 : i32
    %c0_i32_1 = arith.constant 0 : i32
    return %arg0, %c0_i32, %c0_i32_0 : i32, i32, i32
  }
}

module attributes {stable_mosaic.version = 11 : i64} {
  func.func @_fc_kernel(%arg0: i32, %arg1: memref<8x1664xf32, #tpu.memory_space<vmem>>, %arg2: memref<1664x128xf32, #tpu.memory_space<vmem>>, %arg3: memref<1x128xf32, #tpu.memory_space<vmem>>, %arg4: memref<8x128xf32, #tpu.memory_space<vmem>>) attributes {dimension_semantics = [#tpu.dimension_semantics<parallel>], iteration_bounds = array<i64: 1>, scalar_prefetch = 0 : i64, scratch_operands = 0 : i64, tpu.core_type = #tpu.core_type<tc>, window_params = [{transform_indices = @transform_0, window_bounds = array<i64: 8, 1664>}, {pipeline_mode = #tpu.pipeline_mode<synchronous>, transform_indices = @transform_1, window_bounds = array<i64: 1664, 128>}, {pipeline_mode = #tpu.pipeline_mode<synchronous>, transform_indices = @transform_2, window_bounds = array<i64: 1, 128>}, {transform_indices = @transform_3, window_bounds = array<i64: 8, 128>}]} {
    %c0 = arith.constant 0 : index
    %c0_0 = arith.constant 0 : index
    %0 = vector.load %arg1[%c0, %c0_0] : memref<8x1664xf32, #tpu.memory_space<vmem>>, vector<8x1664xf32>
    %c0_1 = arith.constant 0 : index
    %c0_2 = arith.constant 0 : index
    %1 = vector.load %arg2[%c0_1, %c0_2] : memref<1664x128xf32, #tpu.memory_space<vmem>>, vector<1664x128xf32>
    %cst = arith.constant dense<0.000000e+00> : vector<8x128xf32>
    %2 = tpu.matmul %0, %1, %cst {dimension_numbers = #tpu.dot_dimension_numbers<[1], [0], [0], [1], [0, 0, 1, 1], [], []>} : vector<8x1664xf32>, vector<1664x128xf32>, vector<8x128xf32> -> vector<8x128xf32>
    %c0_3 = arith.constant 0 : index
    %c0_4 = arith.constant 0 : index
    %3 = vector.load %arg3[%c0_3, %c0_4] : memref<1x128xf32, #tpu.memory_space<vmem>>, vector<1x128xf32>
    %4 = vector.broadcast %3 : vector<1x128xf32> to vector<8x128xf32>
    %5 = arith.addf %2, %4 : vector<8x128xf32>
    %c0_5 = arith.constant 0 : index
    %c0_6 = arith.constant 0 : index
    %6 = vector.load %arg4[%c0_5, %c0_6] : memref<8x128xf32, #tpu.memory_space<vmem>>, vector<8x128xf32>
    tpu.vector_store %arg4[%c0_5, %c0_6], %5 {strides = array<i32>} : memref<8x128xf32, #tpu.memory_space<vmem>>, vector<8x128xf32>,
    return
  }
  func.func @transform_0(%arg0: i32) -> (i32, i32) {
    %c0_i32 = arith.constant 0 : i32
    %c0_i32_0 = arith.constant 0 : i32
    return %arg0, %c0_i32 : i32, i32
  }
  func.func @transform_1(%arg0: i32) -> (i32, i32) {
    %c0_i32 = arith.constant 0 : i32
    %c0_i32_0 = arith.constant 0 : i32
    %c0_i32_1 = arith.constant 0 : i32
    return %c0_i32, %c0_i32_0 : i32, i32
  }
  func.func @transform_2(%arg0: i32) -> (i32, i32) {
    %c0_i32 = arith.constant 0 : i32
    %c0_i32_0 = arith.constant 0 : i32
    %c0_i32_1 = arith.constant 0 : i32
    return %c0_i32, %c0_i32_0 : i32, i32
  }
  func.func @transform_3(%arg0: i32) -> (i32, i32) {
    %c0_i32 = arith.constant 0 : i32
    %c0_i32_0 = arith.constant 0 : i32
    return %arg0, %c0_i32 : i32, i32
  }
}

</mosaic_0001>

<bundles_post_ra>
// kernel: convnet_forward.3
= control target key start
LH: loop header
LB: loop body
LE: loop exit
PB: predicated region body
PF: predicated region fallthrough
CT: control target
= control target key end

     0   :  { %s627_s12 = smov 0   ;;  %s699_s0 = inlined_call_operand.vmem [shape: bf16[2,32,1024], index: 0, kind: input, shape index: {}]   ;;  %s700_s1 = inlined_call_operand.vmem [shape: bf16[16,32], index: 1, kind: input, shape index: {}]   ;;  %s701_s2 = inlined_call_operand.vmem [shape: f32[16,1], index: 2, kind: input, shape index: {}]   ;;  %s702_s3 = inlined_call_operand.vmem [shape: f32[2,16,256], index: 3, kind: output, shape index: {}]  }
   0x1 LB: > { %s482_s13 = sadd.s32 4294967295, %s604_s12   ;;  %p486_p0 = scmp.ge.s32.totalorder %s604_s12, 1  ;;  %s604_s12 = sphi %s627_s12, %s13_s12  }
   0x2   : > { %p137_p1 = scmp.lt.s32.totalorder %s604_s12, 3 }
   0x4   : > { %p138_p2 = pnand %p486_p0, %p137_p1 }
   0x5   : > { %p161_p3 = scmp.lt.s32.totalorder (!%p138_p2), %s482_s13, 1 }
   0x6   : > { %141 = sbr.rel (%p138_p2) target bundleno = 192 (0xc0), region = 32 }
   0xb   : > { %s704_s13 = smov (!%p161_p3, %s482_s13), 1  ;;  %v391_v0 = vld [vmem:[%s701_s2] sm:$0xff]  ;;  %v606_v1 = vmov 0   ;;  %vm275_vm0 = vcmask 261120   ;;  %v392_v9 = vld [vmem:[%s701_s2 + $0x8] sm:$0xff] }
   0xc   : > { %597 = vset.pattern.permute.xlu0 %v606_v1  ;;  %s569_s16 = sshll.u32 %s704_s13, 7  ;;  %v571_v24 = vld [vmem:[%s700_s1] sm:$0xff]  ;;  %s570_s24 = sshll.u32 %s704_s13, 5 }
   0xd   : > { %407 = vperm.xlu0 %597, %v391_v0   ;;  %s644_s19 = scalar_lea.vmem %s699_s0, %s569_s16  ;;  %s170_s27 = scalar_lea.vmem %s702_s3, %s570_s24 }
   0xe   : > { %v529_v2 = vld [vmem:[%s644_s19 + $0x40] sm:$0xf]  ;;  %v580_v4 = vld [vmem:[%s644_s19 + $0x44] sm:$0xf]  ;;  %v537_v7 = vld [vmem:[%s644_s19 + $0x48] sm:$0xf] }
   0xf   : > { %v584_v3 = vld [vmem:[%s644_s19 + $0x5c] sm:$0xf0]  ;;  %v531_v6 = vld [vmem:[%s644_s19 + $0x60] sm:$0xf0]  ;;  %v585_v8 = vld [vmem:[%s644_s19 + $0x64] sm:$0xf0] }
  0x10   : > { %v530_v5 = vor.u32 %v584_v3, %v529_v2  ;;  %v534_v10 = vor.u32 %v580_v4, %v531_v6  ;;  %v538_v11 = vor.u32 %v585_v8, %v537_v7  ;;  %v581_v12 = vld [vmem:[%s644_s19 + $0x4c] sm:$0xf]  ;;  %v497_v14 = vld [vmem:[%s644_s19] sm:$0xf]  ;;  %v572_v17 = vld [vmem:[%s644_s19 + $0x4] sm:$0xf] }
  0x11   : > { %v539_v13 = vld [vmem:[%s644_s19 + $0x68] sm:$0xf0]  ;;  %v576_v16 = vld [vmem:[%s644_s19 + $0x1c] sm:$0xf0]  ;;  %v499_v18 = vld [vmem:[%s644_s19 + $0x20] sm:$0xf0] }
  0x12   : > { %285 = vmatpush.bf16.msra.mxu0 %v530_v5  ;;  %v542_v15 = vor.u32 %v581_v12, %v539_v13  ;;  %299 = vmatpush.bf16.msra.mxu1 %v534_v10  ;;  %v498_v19 = vor.u32 %v576_v16, %v497_v14  ;;  %v502_v20 = vor.u32 %v572_v17, %v499_v18  ;;  %v505_v21 = vld [vmem:[%s644_s19 + $0x8] sm:$0xf]  ;;  %v573_v23 = vld [vmem:[%s644_s19 + $0xc] sm:$0xf]  ;;  %v553_v27 = vld [vmem:[%s644_s19 + $0x58] sm:$0xf] }
  0x13   : > { %313 = vmatpush.bf16.msra.mxu2 %v538_v11  ;;  %v577_v22 = vld [vmem:[%s644_s19 + $0x24] sm:$0xf0]  ;;  %v507_v26 = vld [vmem:[%s644_s19 + $0x28] sm:$0xf0]  ;;  %v587_v28 = vld [vmem:[%s644_s19 + $0x74] sm:$0xf0] }
  0x14   : > { %327 = vmatpush.bf16.msra.mxu3 %v542_v15  ;;  %v506_v25 = vor.u32 %v577_v22, %v505_v21  ;;  %v510_v29 = vor.u32 %v573_v23, %v507_v26  ;;  %v554_v30 = vor.u32 %v587_v28, %v553_v27  ;;  %v583_v31 = vld [vmem:[%s644_s19 + $0x5c] sm:$0xf]  ;;  %v545_v33 = vld [vmem:[%s644_s19 + $0x50] sm:$0xf]  ;;  %v582_v36 = vld [vmem:[%s644_s19 + $0x54] sm:$0xf] }
  0x15   : > { %v555_v32 = vld [vmem:[%s644_s19 + $0x78] sm:$0xf0]  ;;  %412 = vperm.xlu0 %597, %v392_v9   ;;  %v586_v35 = vld [vmem:[%s644_s19 + $0x6c] sm:$0xf0]  ;;  %v547_v37 = vld [vmem:[%s644_s19 + $0x70] sm:$0xf0] }
  0x16   : > { %286 = vmatpush.bf16.msra.mxu0 %v498_v19  ;;  %v558_v34 = vor.u32 %v583_v31, %v555_v32  ;;  %300 = vmatpush.bf16.msra.mxu1 %v502_v20  ;;  %v546_v38 = vor.u32 %v586_v35, %v545_v33  ;;  %v521_v39 = vld [vmem:[%s644_s19 + $0x18] sm:$0xf]  ;;  %v575_v41 = vld [vmem:[%s644_s19 + $0x1c] sm:$0xf]  ;;  %v550_v42 = vor.u32 %v582_v36, %v547_v37  ;;  %v513_v45 = vld [vmem:[%s644_s19 + $0x10] sm:$0xf] }
  0x17   : > { %314 = vmatpush.bf16.msra.mxu2 %v506_v25  ;;  %v579_v40 = vld [vmem:[%s644_s19 + $0x34] sm:$0xf0]  ;;  %v523_v44 = vld [vmem:[%s644_s19 + $0x38] sm:$0xf0]  ;;  %v578_v46 = vld [vmem:[%s644_s19 + $0x2c] sm:$0xf0] }
  0x18   : > { %328 = vmatpush.bf16.msra.mxu3 %v510_v29  ;;  %v522_v43 = vor.u32 %v579_v40, %v521_v39  ;;  %v526_v47 = vor.u32 %v575_v41, %v523_v44  ;;  %v574_v48 = vld [vmem:[%s644_s19 + $0x14] sm:$0xf]  ;;  %v514_v50 = vor.u32 %v578_v46, %v513_v45 }
  0x19   : > { %559 = vmatmul.msk.bf16.vlgmr.msra.gmra.mxu0 %vm275_vm0, %v571_v24  ;;  %v515_v49 = vld [vmem:[%s644_s19 + $0x30] sm:$0xf0]  ;;  %560 = vmatmul.msk.bf16.vlgmr.msra.gmra.mxu1 %vm275_vm0, %v571_v24 }
  0x1a   : > { %561 = vmatmul.msk.bf16.vlgmr.msra.gmra.mxu2 %vm275_vm0, %v571_v24  ;;  %341 = vmatpush.bf16.msrb.mxu0 %v546_v38  ;;  %v518_v51 = vor.u32 %v574_v48, %v515_v49 }
  0x1b   : > { %369 = vmatpush.bf16.msrb.mxu2 %v554_v30  ;;  %562 = vmatmul.msk.bf16.vlgmr.msra.gmra.mxu3 %vm275_vm0, %v571_v24 }
  0x1c   : > { %383 = vmatpush.bf16.msrb.mxu3 %v558_v34  ;;  %355 = vmatpush.bf16.msrb.mxu1 %v550_v42 }
  0x1e   : > { %342 = vmatpush.bf16.msrb.mxu0 %v514_v50 }
  0x1f   : > { %370 = vmatpush.bf16.msrb.mxu2 %v522_v43 }
  0x20   : > { %384 = vmatpush.bf16.msrb.mxu3 %v526_v47  ;;  %356 = vmatpush.bf16.msrb.mxu1 %v518_v51 }
  0x29   : > { %563 = vmatmul.msk.bf16.vlgmr.msrb.gmra.mxu0 %vm275_vm0, %v571_v24  ;;  %564 = vmatmul.msk.bf16.vlgmr.msrb.gmra.mxu1 %vm275_vm0, %v571_v24 }
  0x2a   : > { %565 = vmatmul.msk.bf16.vlgmr.msrb.gmra.mxu2 %vm275_vm0, %v571_v24 }
  0x2b   : > { %566 = vmatmul.msk.bf16.vlgmr.msrb.gmra.mxu3 %vm275_vm0, %v571_v24 }
  0x7f   : > { %v408_v3 = vpop.permute.xlu0 %407 }
  0x87   : > { %v413_v20 = vpop.permute.xlu0 %412 }
  0x96   : > { %v288_v52 = vpop.f32.mrf.mxu0  ;;  %v302_v53 = vpop.f32.mrf.mxu1 }
  0x9d   : > { %v316_v54 = vpop.f32.mrf.mxu2 }
  0x9e   : > { %v330_v55 = vpop.f32.mrf.mxu3  ;;  %v290_v56 = vpop.f32.mrf.mxu0  ;;  %v393_v63 = vmax.f32 %v288_v52, %v316_v54 }
  0x9f   : > { %v304_v57 = vpop.f32.mrf.mxu1  ;;  %v394_v2 = vmax.f32 %v302_v53, %v330_v55 }
  0xa5   : > { %v318_v58 = vpop.f32.mrf.mxu2 }
  0xa6   : > { %v332_v59 = vpop.f32.mrf.mxu3  ;;  %v344_v60 = vpop.f32.mrf.mxu0  ;;  %v395_v13 = vmax.f32 %v290_v56, %v318_v58 }
  0xa7   : > { %v358_v61 = vpop.f32.mrf.mxu1  ;;  %v396_v17 = vmax.f32 %v304_v57, %v332_v59 }
  0xad   : > { %v372_v62 = vpop.f32.mrf.mxu2 }
  0xae   : > { %v397_v0 = vmax.f32 %v344_v60, %v372_v62  ;;  %v386_v1 = vpop.f32.mrf.mxu3  ;;  %v346_v11 = vpop.f32.mrf.mxu0 }
  0xaf   : > { %v398_v4 = vmax.f32 %v358_v61, %v386_v1  ;;  %v360_v14 = vpop.f32.mrf.mxu1 }
  0xb0   : > { %v401_v5 = vmax.f32 %v393_v63, %v397_v0 }
  0xb1   : > { %v402_v6 = vmax.f32 %v394_v2, %v398_v4 }
  0xb2   : > { %v415_v7 = vadd.f32 %v408_v3, %v401_v5 }
  0xb3   : > { %v416_v8 = vadd.f32 %v408_v3, %v402_v6 }
  0xb4   : > { %v419_v9 = vmax.f32 %v415_v7, 0.0 }
  0xb5   : > { %v420_v10 = vmax.f32 %v416_v8, 0.0  ;;  %v374_v12 = vpop.f32.mrf.mxu2 }
  0xb6   : > { %423 = vst [vmem:[%s170_s27] sm:$0xff] %v419_v9  ;;  %v399_v15 = vmax.f32 %v346_v11, %v374_v12  ;;  %v388_v16 = vpop.f32.mrf.mxu3 }
  0xb7   : > { %424 = vst [vmem:[%s170_s27 + $0x8] sm:$0xff] %v420_v10  ;;  %v400_v18 = vmax.f32 %v360_v14, %v388_v16 }
  0xb8   : > { %v403_v19 = vmax.f32 %v395_v13, %v399_v15 }
  0xb9   : > { %v404_v21 = vmax.f32 %v396_v17, %v400_v18 }
  0xba   : > { %v417_v22 = vadd.f32 %v413_v20, %v403_v19 }
  0xbb   : > { %v418_v23 = vadd.f32 %v413_v20, %v404_v21 }
  0xbc   : > { %v421_v24 = vmax.f32 %v417_v22, 0.0 }
  0xbd   : > { %v422_v25 = vmax.f32 %v418_v23, 0.0 }
  0xbe   : > { %425 = vst [vmem:[%s170_s27 + $0x10] sm:$0xff] %v421_v24 }
  0xbf   : > { %426 = vst [vmem:[%s170_s27 + $0x18] sm:$0xff] %v422_v25 }
  0xc0 PF: > { %s13_s12 = sadd.s32 1, %s604_s12  }
  0xc1   : > { %p10_p4 = scmp.ge.s32.totalorder %s13_s12, 4  }
  0xc3   :  { %12 = sbr.rel (!%p10_p4) target bundleno = 1 (0x1), region = 62 }

// kernel: convnet_forward.4
= control target key start
LH: loop header
LB: loop body
LE: loop exit
PB: predicated region body
PF: predicated region fallthrough
CT: control target
= control target key end

     0   :  { %s1840_s12 = smov 0   ;;  %s2215_s0 = inlined_call_operand.vmem [shape: bf16[2,400,512], index: 0, kind: input, shape index: {}]   ;;  %s2216_s1 = inlined_call_operand.vmem [shape: bf16[32,400], index: 1, kind: input, shape index: {}]   ;;  %s2217_s2 = inlined_call_operand.vmem [shape: f32[32,1], index: 2, kind: input, shape index: {}]   ;;  %s2218_s3 = inlined_call_operand.vmem [shape: f32[2,32,128], index: 3, kind: output, shape index: {}]  }
   0x1 LB: > { %s1232_s13 = sadd.s32 4294967295, %s1817_s12   ;;  %p1236_p0 = scmp.ge.s32.totalorder %s1817_s12, 1  ;;  %s1817_s12 = sphi %s1840_s12, %s13_s12  }
   0x2   : > { %p137_p1 = scmp.lt.s32.totalorder %s1817_s12, 3 }
   0x4   : > { %p138_p2 = pnand %p1236_p0, %p137_p1 }
   0x5   : > { %p161_p3 = scmp.lt.s32.totalorder (!%p138_p2), %s1232_s13, 1 }
   0x6   : > { %141 = sbr.rel (%p138_p2) target bundleno = 314 (0x13a), region = 32 }
   0xb   : > { %s2220_s13 = smov (!%p161_p3, %s1232_s13), 1  ;;  %v1684_v0 = vld [vmem:[%s2216_s1 + $0xc] sm:$0xf]  ;;  %v1252_v1 = vld [vmem:[%s2216_s1 + $0x18] sm:$0xf0]  ;;  %vm818_vm0 = vcmask 130048  }
   0xc   : > { %s1799_s14 = smul.u32 800, %s2220_s13  ;;  %v1874_v18 = vor.u32 %v1684_v0, %v1252_v1  ;;  %v1688_v60 = vld [vmem:[%s2216_s1 + $0x2c] sm:$0xf]  ;;  %v1268_v62 = vld [vmem:[%s2216_s1 + $0x38] sm:$0xf0]  ;;  %s1682_s6 = sshll.u32 %s2220_s13, 5 }
   0xd   : > { %s2197_s9 = scalar_lea.vmem %s2218_s3, %s1682_s6 }
   0xe   : > { %s1854_s17 = scalar_lea.vmem %s2215_s0, %s1799_s14 }
   0xf   : > { %v1386_v2 = vld [vmem:[%s1854_s17 + $0xe0] sm:$0xf]  ;;  %v1721_v3 = vld [vmem:[%s1854_s17 + $0xec] sm:$0xf0]  ;;  %v1719_v23 = vld [vmem:[%s1854_s17 + $0xe4] sm:$0xf] }
  0x10   : > { %v1514_v4 = vld [vmem:[%s1854_s17 + $0x1e0] sm:$0xf]  ;;  %v1387_v5 = vor.u32 %v1721_v3, %v1386_v2  ;;  %v1753_v6 = vld [vmem:[%s1854_s17 + $0x1ec] sm:$0xf0]  ;;  %v1388_v25 = vld [vmem:[%s1854_s17 + $0xf0] sm:$0xf0] }
  0x11   : > { %v1642_v7 = vld [vmem:[%s1854_s17 + $0x2e0] sm:$0xf]  ;;  %v1785_v8 = vld [vmem:[%s1854_s17 + $0x2ec] sm:$0xf0]  ;;  %v1515_v9 = vor.u32 %v1753_v6, %v1514_v4  ;;  %v1391_v28 = vor.u32 %v1719_v23, %v1388_v25  ;;  %v1715_v34 = vld [vmem:[%s1854_s17 + $0xc4] sm:$0xf] }
  0x12   : > { %v1643_v10 = vor.u32 %v1785_v8, %v1642_v7  ;;  %v1658_v11 = vld [vmem:[%s1854_s17 + $0x300] sm:$0xf]  ;;  %v1789_v12 = vld [vmem:[%s1854_s17 + $0x30c] sm:$0xf0]  ;;  %825 = vmatpush.bf16.msra.mxu0 %v1387_v5  ;;  %v1372_v35 = vld [vmem:[%s1854_s17 + $0xd0] sm:$0xf0] }
  0x13   : > { %v1370_v13 = vld [vmem:[%s1854_s17 + $0xc0] sm:$0xf]  ;;  %v1659_v14 = vor.u32 %v1789_v12, %v1658_v11  ;;  %v1717_v15 = vld [vmem:[%s1854_s17 + $0xcc] sm:$0xf0]  ;;  %844 = vmatpush.bf16.msra.mxu1 %v1515_v9  ;;  %v1375_v40 = vor.u32 %v1715_v34, %v1372_v35  ;;  %v1711_v45 = vld [vmem:[%s1854_s17 + $0xa4] sm:$0xf] }
  0x14   : > { %v1498_v16 = vld [vmem:[%s1854_s17 + $0x1c0] sm:$0xf]  ;;  %v1749_v17 = vld [vmem:[%s1854_s17 + $0x1cc] sm:$0xf0]  ;;  %863 = vmatpush.bf16.msra.mxu2 %v1643_v10  ;;  %v1371_v19 = vor.u32 %v1717_v15, %v1370_v13  ;;  %v1356_v46 = vld [vmem:[%s1854_s17 + $0xb0] sm:$0xf0]  ;;  %v1920_v10 = vor.u32 %v1688_v60, %v1268_v62 }
  0x15   : > { %v1499_v20 = vor.u32 %v1749_v17, %v1498_v16  ;;  %v1626_v21 = vld [vmem:[%s1854_s17 + $0x2c0] sm:$0xf]  ;;  %v1781_v22 = vld [vmem:[%s1854_s17 + $0x2cc] sm:$0xf0]  ;;  %889 = vmatpush.bf16.msra.mxu3 %v1659_v14  ;;  %v1359_v52 = vor.u32 %v1711_v45, %v1356_v46  ;;  %v1707_v57 = vld [vmem:[%s1854_s17 + $0x84] sm:$0xf] }
  0x16   : > { %v1627_v24 = vor.u32 %v1781_v22, %v1626_v21  ;;  %v1354_v26 = vld [vmem:[%s1854_s17 + $0xa0] sm:$0xf]  ;;  %v1713_v27 = vld [vmem:[%s1854_s17 + $0xac] sm:$0xf0]  ;;  %826 = vmatpush.bf16.msra.mxu0 %v1371_v19  ;;  %v1340_v58 = vld [vmem:[%s1854_s17 + $0x90] sm:$0xf0] }
  0x17   : > { %v1482_v29 = vld [vmem:[%s1854_s17 + $0x1a0] sm:$0xf]  ;;  %v1745_v30 = vld [vmem:[%s1854_s17 + $0x1ac] sm:$0xf0]  ;;  %v1355_v32 = vor.u32 %v1713_v27, %v1354_v26  ;;  %845 = vmatpush.bf16.msra.mxu1 %v1499_v20  ;;  %v1343_v2 = vor.u32 %v1707_v57, %v1340_v58  ;;  %v1703_v7 = vld [vmem:[%s1854_s17 + $0x64] sm:$0xf] }
  0x18   : > { %v1610_v31 = vld [vmem:[%s1854_s17 + $0x2a0] sm:$0xf]  ;;  %v1777_v33 = vld [vmem:[%s1854_s17 + $0x2ac] sm:$0xf0]  ;;  %1672 = vmatmul.msk.bf16.vlgmr.msra.gmra.mxu3 %vm818_vm0, %v1874_v18  ;;  %v1483_v36 = vor.u32 %v1745_v30, %v1482_v29  ;;  %864 = vmatpush.bf16.msra.mxu2 %v1627_v24  ;;  %v1324_v8 = vld [vmem:[%s1854_s17 + $0x70] sm:$0xf0] }
  0x19   : > { %v1338_v37 = vld [vmem:[%s1854_s17 + $0x80] sm:$0xf]  ;;  %v1709_v38 = vld [vmem:[%s1854_s17 + $0x8c] sm:$0xf0]  ;;  %901 = vmatpush.bf16.msrb.mxu3 %v1391_v28  ;;  %v1611_v39 = vor.u32 %v1777_v33, %v1610_v31  ;;  %v1327_v15 = vor.u32 %v1703_v7, %v1324_v8  ;;  %v1699_v21 = vld [vmem:[%s1854_s17 + $0x44] sm:$0xf] }
  0x1a   : > { %v1466_v41 = vld [vmem:[%s1854_s17 + $0x180] sm:$0xf]  ;;  %v1741_v42 = vld [vmem:[%s1854_s17 + $0x18c] sm:$0xf0]  ;;  %827 = vmatpush.bf16.msra.mxu0 %v1355_v32  ;;  %v1339_v47 = vor.u32 %v1709_v38, %v1338_v37  ;;  %v1308_v22 = vld [vmem:[%s1854_s17 + $0x50] sm:$0xf0] }
  0x1b   : > { %v1594_v43 = vld [vmem:[%s1854_s17 + $0x280] sm:$0xf]  ;;  %v1773_v44 = vld [vmem:[%s1854_s17 + $0x28c] sm:$0xf0]  ;;  %846 = vmatpush.bf16.msra.mxu1 %v1483_v36  ;;  %v1467_v48 = vor.u32 %v1741_v42, %v1466_v41  ;;  %v1311_v32 = vor.u32 %v1699_v21, %v1308_v22  ;;  %v1695_v33 = vld [vmem:[%s1854_s17 + $0x24] sm:$0xf] }
  0x1c   : > { %v1322_v49 = vld [vmem:[%s1854_s17 + $0x60] sm:$0xf]  ;;  %v1705_v50 = vld [vmem:[%s1854_s17 + $0x6c] sm:$0xf0]  ;;  %865 = vmatpush.bf16.msra.mxu2 %v1611_v39  ;;  %v1595_v51 = vor.u32 %v1773_v44, %v1594_v43  ;;  %v1751_v34 = vld [vmem:[%s1854_s17 + $0x1e4] sm:$0xf] }
  0x1d   : > { %902 = vmatpush.bf16.msrb.mxu3 %v1375_v40  ;;  %v1450_v53 = vld [vmem:[%s1854_s17 + $0x160] sm:$0xf]  ;;  %v1737_v54 = vld [vmem:[%s1854_s17 + $0x16c] sm:$0xf0]  ;;  %v1323_v59 = vor.u32 %v1705_v50, %v1322_v49  ;;  %v1516_v35 = vld [vmem:[%s1854_s17 + $0x1f0] sm:$0xf0] }
  0x1e   : > { %v1578_v55 = vld [vmem:[%s1854_s17 + $0x260] sm:$0xf]  ;;  %v1769_v56 = vld [vmem:[%s1854_s17 + $0x26c] sm:$0xf0]  ;;  %828 = vmatpush.bf16.msra.mxu0 %v1339_v47  ;;  %v1451_v61 = vor.u32 %v1737_v54, %v1450_v53  ;;  %v1292_v36 = vld [vmem:[%s1854_s17 + $0x30] sm:$0xf0]  ;;  %v1519_v47 = vor.u32 %v1751_v34, %v1516_v35 }
  0x1f   : > { %847 = vmatpush.bf16.msra.mxu1 %v1467_v48  ;;  %v1306_v63 = vld [vmem:[%s1854_s17 + $0x40] sm:$0xf]  ;;  %v1701_v0 = vld [vmem:[%s1854_s17 + $0x4c] sm:$0xf0]  ;;  %v1579_v1 = vor.u32 %v1769_v56, %v1578_v55  ;;  %v1683_v40 = vld [vmem:[%s2216_s1 + $0x4] sm:$0xf]  ;;  %v1295_v49 = vor.u32 %v1695_v33, %v1292_v36 }
  0x20   : > { %866 = vmatpush.bf16.msra.mxu2 %v1595_v51  ;;  %v1434_v3 = vld [vmem:[%s1854_s17 + $0x140] sm:$0xf]  ;;  %v1733_v4 = vld [vmem:[%s1854_s17 + $0x14c] sm:$0xf0]  ;;  %v1307_v9 = vor.u32 %v1701_v0, %v1306_v63  ;;  %v1787_v41 = vld [vmem:[%s1854_s17 + $0x304] sm:$0xf] }
  0x21   : > { %903 = vmatpush.bf16.msrb.mxu3 %v1359_v52  ;;  %v1562_v5 = vld [vmem:[%s1854_s17 + $0x240] sm:$0xf]  ;;  %v1765_v6 = vld [vmem:[%s1854_s17 + $0x24c] sm:$0xf0]  ;;  %v1435_v11 = vor.u32 %v1733_v4, %v1434_v3  ;;  %v1660_v42 = vld [vmem:[%s1854_s17 + $0x310] sm:$0xf0] }
  0x22   : > { %829 = vmatpush.bf16.msra.mxu0 %v1323_v59  ;;  %v1290_v12 = vld [vmem:[%s1854_s17 + $0x20] sm:$0xf]  ;;  %v1697_v13 = vld [vmem:[%s1854_s17 + $0x2c] sm:$0xf0]  ;;  %v1563_v14 = vor.u32 %v1765_v6, %v1562_v5  ;;  %v1244_v44 = vld [vmem:[%s2216_s1 + $0x10] sm:$0xf0]  ;;  %v1663_v54 = vor.u32 %v1787_v41, %v1660_v42 }
  0x23   : > { %848 = vmatpush.bf16.msra.mxu1 %v1451_v61  ;;  %v1418_v16 = vld [vmem:[%s1854_s17 + $0x120] sm:$0xf]  ;;  %v1729_v17 = vld [vmem:[%s1854_s17 + $0x12c] sm:$0xf0]  ;;  %v1291_v23 = vor.u32 %v1697_v13, %v1290_v12  ;;  %v1250_v45 = vld [vmem:[%s2216_s1 + $0x8] sm:$0xf]  ;;  %v1970_v58 = vor.u32 %v1683_v40, %v1244_v44 }
  0x24   : > { %867 = vmatpush.bf16.msra.mxu2 %v1579_v1  ;;  %v1546_v19 = vld [vmem:[%s1854_s17 + $0x220] sm:$0xf]  ;;  %v1761_v20 = vld [vmem:[%s1854_s17 + $0x22c] sm:$0xf0]  ;;  %v1419_v27 = vor.u32 %v1729_v17, %v1418_v16  ;;  %v1686_v46 = vld [vmem:[%s2216_s1 + $0x14] sm:$0xf0] }
  0x25   : > { %904 = vmatpush.bf16.msrb.mxu3 %v1343_v2  ;;  %v1274_v24 = vld [vmem:[%s1854_s17] sm:$0xf]  ;;  %v1693_v25 = vld [vmem:[%s1854_s17 + $0xc] sm:$0xf0]  ;;  %v1547_v31 = vor.u32 %v1761_v20, %v1546_v19  ;;  %v1691_v50 = vld [vmem:[%s1854_s17 + $0x4] sm:$0xf]  ;;  %v1974_v61 = vor.u32 %v1686_v46, %v1250_v45 }
  0x26   : > { %830 = vmatpush.bf16.msra.mxu0 %v1307_v9  ;;  %v1402_v26 = vld [vmem:[%s1854_s17 + $0x100] sm:$0xf]  ;;  %v1725_v28 = vld [vmem:[%s1854_s17 + $0x10c] sm:$0xf0]  ;;  %v1275_v39 = vor.u32 %v1693_v25, %v1274_v24  ;;  %v1783_v51 = vld [vmem:[%s1854_s17 + $0x2e4] sm:$0xf] }
  0x27   : > { %849 = vmatpush.bf16.msra.mxu1 %v1435_v11  ;;  %v1530_v29 = vld [vmem:[%s1854_s17 + $0x200] sm:$0xf]  ;;  %v1757_v30 = vld [vmem:[%s1854_s17 + $0x20c] sm:$0xf0]  ;;  %v1403_v43 = vor.u32 %v1725_v28, %v1402_v26  ;;  %v1644_v52 = vld [vmem:[%s1854_s17 + $0x2f0] sm:$0xf0] }
  0x28   : > { %1673 = vmatmul.msk.bf16.gmra.mxu3 %vm818_vm0, %v1920_v10  ;;  %868 = vmatpush.bf16.msra.mxu2 %v1563_v14  ;;  %v1242_v37 = vld [vmem:[%s2216_s1] sm:$0xf]  ;;  %v1685_v38 = vld [vmem:[%s2216_s1 + $0xc] sm:$0xf0]  ;;  %v1531_v48 = vor.u32 %v1757_v30, %v1530_v29  ;;  %v1276_v55 = vld [vmem:[%s1854_s17 + $0x10] sm:$0xf0]  ;;  %v1647_v62 = vor.u32 %v1783_v51, %v1644_v52 }
  0x29   : > { %905 = vmatpush.bf16.msrb.mxu3 %v1327_v15  ;;  %v1965_v53 = vor.u32 %v1685_v38, %v1242_v37  ;;  %v1747_v56 = vld [vmem:[%s1854_s17 + $0x1c4] sm:$0xf]  ;;  %v1500_v57 = vld [vmem:[%s1854_s17 + $0x1d0] sm:$0xf0]  ;;  %v1394_v59 = vld [vmem:[%s1854_s17 + $0xe8] sm:$0xf]  ;;  %v1279_v63 = vor.u32 %v1691_v50, %v1276_v55 }
  0x2a   : > { %831 = vmatpush.bf16.msra.mxu0 %v1291_v23  ;;  %v1722_v60 = vld [vmem:[%s1854_s17 + $0xf4] sm:$0xf0]  ;;  %v1503_v0 = vor.u32 %v1747_v56, %v1500_v57  ;;  %v1779_v1 = vld [vmem:[%s1854_s17 + $0x2c4] sm:$0xf]  ;;  %v1628_v2 = vld [vmem:[%s1854_s17 + $0x2d0] sm:$0xf0] }
  0x2b   : > { %850 = vmatpush.bf16.msra.mxu1 %v1419_v27  ;;  %v1395_v3 = vor.u32 %v1722_v60, %v1394_v59  ;;  %v1743_v4 = vld [vmem:[%s1854_s17 + $0x1a4] sm:$0xf]  ;;  %v1484_v5 = vld [vmem:[%s1854_s17 + $0x1b0] sm:$0xf0]  ;;  %v1378_v6 = vld [vmem:[%s1854_s17 + $0xc8] sm:$0xf]  ;;  %v1631_v8 = vor.u32 %v1779_v1, %v1628_v2 }
  0x2c   : > { %869 = vmatpush.bf16.msra.mxu2 %v1547_v31  ;;  %v1718_v7 = vld [vmem:[%s1854_s17 + $0xd4] sm:$0xf0]  ;;  %v1487_v9 = vor.u32 %v1743_v4, %v1484_v5  ;;  %v1775_v11 = vld [vmem:[%s1854_s17 + $0x2a4] sm:$0xf]  ;;  %v1612_v12 = vld [vmem:[%s1854_s17 + $0x2b0] sm:$0xf0] }
  0x2d   : > { %906 = vmatpush.bf16.msrb.mxu3 %v1311_v32  ;;  %v1379_v13 = vor.u32 %v1718_v7, %v1378_v6  ;;  %v1739_v14 = vld [vmem:[%s1854_s17 + $0x184] sm:$0xf]  ;;  %v1468_v15 = vld [vmem:[%s1854_s17 + $0x190] sm:$0xf0]  ;;  %v1362_v16 = vld [vmem:[%s1854_s17 + $0xa8] sm:$0xf]  ;;  %v1615_v19 = vor.u32 %v1775_v11, %v1612_v12 }
  0x2e   : > { %832 = vmatpush.bf16.msra.mxu0 %v1275_v39  ;;  %v1714_v17 = vld [vmem:[%s1854_s17 + $0xb4] sm:$0xf0]  ;;  %v1771_v20 = vld [vmem:[%s1854_s17 + $0x284] sm:$0xf]  ;;  %v1471_v21 = vor.u32 %v1739_v14, %v1468_v15  ;;  %v1596_v22 = vld [vmem:[%s1854_s17 + $0x290] sm:$0xf0] }
  0x2f   : > { %851 = vmatpush.bf16.msra.mxu1 %v1403_v43  ;;  %v1258_v23 = vld [vmem:[%s2216_s1 + $0x20] sm:$0xf]  ;;  %v1735_v24 = vld [vmem:[%s1854_s17 + $0x164] sm:$0xf]  ;;  %v1363_v25 = vor.u32 %v1714_v17, %v1362_v16  ;;  %v1452_v26 = vld [vmem:[%s1854_s17 + $0x170] sm:$0xf0]  ;;  %v1599_v33 = vor.u32 %v1771_v20, %v1596_v22 }
  0x30   : > { %870 = vmatpush.bf16.msra.mxu2 %v1531_v48  ;;  %v1666_v27 = vld [vmem:[%s1854_s17 + $0x308] sm:$0xf]  ;;  %v1790_v28 = vld [vmem:[%s1854_s17 + $0x314] sm:$0xf0]  ;;  %v1689_v29 = vld [vmem:[%s2216_s1 + $0x2c] sm:$0xf0]  ;;  %v1455_v38 = vor.u32 %v1735_v24, %v1452_v26 }
  0x31   : > { %907 = vmatpush.bf16.msrb.mxu3 %v1295_v49  ;;  %833 = vmatmul.bf16.vlgmr.msra.gmra.mxu0 %v1965_v53  ;;  %v1346_v30 = vld [vmem:[%s1854_s17 + $0x88] sm:$0xf]  ;;  %v1710_v31 = vld [vmem:[%s1854_s17 + $0x94] sm:$0xf0]  ;;  %v1667_v32 = vor.u32 %v1790_v28, %v1666_v27  ;;  %v1687_v34 = vld [vmem:[%s2216_s1 + $0x24] sm:$0xf]  ;;  %v2020_v41 = vor.u32 %v1689_v29, %v1258_v23 }
  0x32   : > { %920 = vmatpush.bf16.msrb.mxu0 %v1519_v47  ;;  %852 = vmatmul.bf16.vlgmr.msra.gmra.mxu1 %v1970_v58  ;;  %v1260_v35 = vld [vmem:[%s2216_s1 + $0x30] sm:$0xf0]  ;;  %v1266_v36 = vld [vmem:[%s2216_s1 + $0x28] sm:$0xf]  ;;  %v1690_v37 = vld [vmem:[%s2216_s1 + $0x34] sm:$0xf0]  ;;  %v1347_v42 = vor.u32 %v1710_v31, %v1346_v30 }
  0x33   : > { %871 = vmatmul.bf16.vlgmr.msra.gmra.mxu2 %v1974_v61  ;;  %939 = vmatpush.bf16.msrb.mxu1 %v1647_v62  ;;  %v1767_v39 = vld [vmem:[%s1854_s17 + $0x264] sm:$0xf]  ;;  %v1580_v40 = vld [vmem:[%s1854_s17 + $0x270] sm:$0xf0]  ;;  %v2024_v45 = vor.u32 %v1687_v34, %v1260_v35  ;;  %v1330_v46 = vld [vmem:[%s1854_s17 + $0x68] sm:$0xf]  ;;  %v2028_v48 = vor.u32 %v1690_v37, %v1266_v36 }
  0x34   : > { %965 = vmatpush.bf16.msrb.mxu2 %v1663_v54  ;;  %v1731_v43 = vld [vmem:[%s1854_s17 + $0x144] sm:$0xf]  ;;  %v1436_v44 = vld [vmem:[%s1854_s17 + $0x150] sm:$0xf0]  ;;  %v1706_v47 = vld [vmem:[%s1854_s17 + $0x74] sm:$0xf0]  ;;  %v1583_v49 = vor.u32 %v1767_v39, %v1580_v40 }
  0x35   : > { %908 = vmatpush.bf16.msrb.mxu3 %v1279_v63  ;;  %v1439_v50 = vor.u32 %v1731_v43, %v1436_v44  ;;  %v1763_v51 = vld [vmem:[%s1854_s17 + $0x244] sm:$0xf]  ;;  %v1564_v52 = vld [vmem:[%s1854_s17 + $0x250] sm:$0xf0]  ;;  %v1331_v54 = vor.u32 %v1706_v47, %v1330_v46  ;;  %v1314_v57 = vld [vmem:[%s1854_s17 + $0x48] sm:$0xf] }
  0x36   : > { %921 = vmatpush.bf16.msrb.mxu0 %v1503_v0  ;;  %v1727_v55 = vld [vmem:[%s1854_s17 + $0x124] sm:$0xf]  ;;  %v1420_v56 = vld [vmem:[%s1854_s17 + $0x130] sm:$0xf0]  ;;  %v1702_v59 = vld [vmem:[%s1854_s17 + $0x54] sm:$0xf0]  ;;  %v1567_v60 = vor.u32 %v1763_v51, %v1564_v52 }
  0x37   : > { %940 = vmatpush.bf16.msrb.mxu1 %v1631_v8  ;;  %v1423_v62 = vor.u32 %v1727_v55, %v1420_v56  ;;  %v1759_v63 = vld [vmem:[%s1854_s17 + $0x224] sm:$0xf]  ;;  %v1548_v0 = vld [vmem:[%s1854_s17 + $0x230] sm:$0xf0]  ;;  %v1315_v1 = vor.u32 %v1702_v59, %v1314_v57  ;;  %v1298_v4 = vld [vmem:[%s1854_s17 + $0x28] sm:$0xf] }
  0x38   : > { %909 = vmatmul.bf16.vlgmr.msrb.gmra.mxu3 %v1965_v53  ;;  %1041 = vmatpush.bf16.msra.mxu2 %v1667_v32  ;;  %v1723_v2 = vld [vmem:[%s1854_s17 + $0x104] sm:$0xf]  ;;  %v1698_v5 = vld [vmem:[%s1854_s17 + $0x34] sm:$0xf0]  ;;  %v1522_v6 = vld [vmem:[%s1854_s17 + $0x1e8] sm:$0xf]  ;;  %v1551_v8 = vor.u32 %v1759_v63, %v1548_v0 }
  0x39   : > { %977 = vmatpush.bf16.msra.mxu3 %v1395_v3  ;;  %v1404_v3 = vld [vmem:[%s1854_s17 + $0x110] sm:$0xf0]  ;;  %v1754_v7 = vld [vmem:[%s1854_s17 + $0x1f4] sm:$0xf0]  ;;  %v1755_v11 = vld [vmem:[%s1854_s17 + $0x204] sm:$0xf] }
  0x3a   : > { %922 = vmatpush.bf16.msrb.mxu0 %v1487_v9  ;;  %v1407_v9 = vor.u32 %v1723_v2, %v1404_v3  ;;  %v1532_v12 = vld [vmem:[%s1854_s17 + $0x210] sm:$0xf0]  ;;  %v1523_v14 = vor.u32 %v1754_v7, %v1522_v6  ;;  %v1650_v15 = vld [vmem:[%s1854_s17 + $0x2e8] sm:$0xf]  ;;  %v1786_v16 = vld [vmem:[%s1854_s17 + $0x2f4] sm:$0xf0] }
  0x3b   : > { %941 = vmatpush.bf16.msrb.mxu1 %v1615_v19  ;;  %v1282_v17 = vld [vmem:[%s1854_s17 + $0x8] sm:$0xf]  ;;  %v1694_v19 = vld [vmem:[%s1854_s17 + $0x14] sm:$0xf0]  ;;  %v1535_v20 = vor.u32 %v1755_v11, %v1532_v12  ;;  %v1651_v23 = vor.u32 %v1786_v16, %v1650_v15  ;;  %v1720_v24 = vld [vmem:[%s1854_s17 + $0xec] sm:$0xf] }
  0x3c   : > { %v1750_v22 = vld [vmem:[%s1854_s17 + $0x1d4] sm:$0xf0]  ;;  %v1283_v26 = vor.u32 %v1694_v19, %v1282_v17  ;;  %v1634_v27 = vld [vmem:[%s1854_s17 + $0x2c8] sm:$0xf]  ;;  %v1716_v36 = vld [vmem:[%s1854_s17 + $0xcc] sm:$0xf] }
  0x3d   : > { %978 = vmatpush.bf16.msra.mxu3 %v1379_v13  ;;  %v1299_v13 = vor.u32 %v1698_v5, %v1298_v4  ;;  %v1782_v28 = vld [vmem:[%s1854_s17 + $0x2d4] sm:$0xf0]  ;;  %v1490_v31 = vld [vmem:[%s1854_s17 + $0x1a8] sm:$0xf]  ;;  %v1380_v37 = vld [vmem:[%s1854_s17 + $0xd8] sm:$0xf0] }
  0x3e   : > { %923 = vmatpush.bf16.msrb.mxu0 %v1471_v21  ;;  %v1506_v21 = vld [vmem:[%s1854_s17 + $0x1c8] sm:$0xf]  ;;  %v1746_v32 = vld [vmem:[%s1854_s17 + $0x1b4] sm:$0xf0]  ;;  %v1668_v43 = vld [vmem:[%s1854_s17 + $0x318] sm:$0xf0]  ;;  %v1383_v46 = vor.u32 %v1716_v36, %v1380_v37 }
  0x3f   : > { %942 = vmatpush.bf16.msrb.mxu1 %v1599_v33  ;;  %v1507_v29 = vor.u32 %v1750_v22, %v1506_v21  ;;  %v1635_v33 = vor.u32 %v1782_v28, %v1634_v27  ;;  %v1618_v34 = vld [vmem:[%s1854_s17 + $0x2a8] sm:$0xf]  ;;  %v1778_v35 = vld [vmem:[%s1854_s17 + $0x2b4] sm:$0xf0]  ;;  %v1712_v51 = vld [vmem:[%s1854_s17 + $0xac] sm:$0xf] }
  0x40   : > { %v1474_v39 = vld [vmem:[%s1854_s17 + $0x188] sm:$0xf]  ;;  %v1742_v40 = vld [vmem:[%s1854_s17 + $0x194] sm:$0xf0]  ;;  %v1619_v44 = vor.u32 %v1778_v35, %v1618_v34  ;;  %v1364_v52 = vld [vmem:[%s1854_s17 + $0xb8] sm:$0xf0] }
  0x41   : > { %979 = vmatpush.bf16.msra.mxu3 %v1363_v25  ;;  %838 = vmatmul.bf16.gmra.mxu0 %v2020_v41  ;;  %v1396_v25 = vld [vmem:[%s1854_s17 + $0xf8] sm:$0xf0]  ;;  %v1602_v47 = vld [vmem:[%s1854_s17 + $0x288] sm:$0xf]  ;;  %v1738_v56 = vld [vmem:[%s1854_s17 + $0x174] sm:$0xf0]  ;;  %v1367_v59 = vor.u32 %v1712_v51, %v1364_v52 }
  0x42   : > { %924 = vmatpush.bf16.msrb.mxu0 %v1455_v38  ;;  %857 = vmatmul.bf16.gmra.mxu1 %v2024_v45  ;;  %v1399_v30 = vor.u32 %v1720_v24, %v1396_v25  ;;  %v1491_v38 = vor.u32 %v1746_v32, %v1490_v31  ;;  %v1458_v55 = vld [vmem:[%s1854_s17 + $0x168] sm:$0xf]  ;;  %v1708_v63 = vld [vmem:[%s1854_s17 + $0x8c] sm:$0xf]  ;;  %v1348_v0 = vld [vmem:[%s1854_s17 + $0x98] sm:$0xf0] }
  0x43   : > { %876 = vmatmul.bf16.gmra.mxu2 %v2028_v48  ;;  %943 = vmatpush.bf16.msrb.mxu1 %v1583_v49  ;;  %v1442_v2 = vld [vmem:[%s1854_s17 + $0x148] sm:$0xf]  ;;  %v1734_v3 = vld [vmem:[%s1854_s17 + $0x154] sm:$0xf0]  ;;  %v1351_v5 = vor.u32 %v1708_v63, %v1348_v0  ;;  %v1700_v19 = vld [vmem:[%s1854_s17 + $0x4c] sm:$0xf] }
  0x44   : > { %v1570_v6 = vld [vmem:[%s1854_s17 + $0x248] sm:$0xf]  ;;  %v1766_v7 = vld [vmem:[%s1854_s17 + $0x254] sm:$0xf0]  ;;  %v1443_v11 = vor.u32 %v1734_v3, %v1442_v2  ;;  %v1752_v27 = vld [vmem:[%s1854_s17 + $0x1ec] sm:$0xf] }
  0x45   : > { %980 = vmatpush.bf16.msra.mxu3 %v1347_v42  ;;  %v1788_v42 = vld [vmem:[%s1854_s17 + $0x30c] sm:$0xf]  ;;  %v1426_v12 = vld [vmem:[%s1854_s17 + $0x128] sm:$0xf]  ;;  %v1762_v17 = vld [vmem:[%s1854_s17 + $0x234] sm:$0xf0] }
  0x46   : > { %925 = vmatpush.bf16.msrb.mxu0 %v1439_v50  ;;  %v1671_v49 = vor.u32 %v1788_v42, %v1668_v43  ;;  %v1774_v50 = vld [vmem:[%s1854_s17 + $0x294] sm:$0xf0]  ;;  %v1554_v16 = vld [vmem:[%s1854_s17 + $0x228] sm:$0xf]  ;;  %v1524_v28 = vld [vmem:[%s1854_s17 + $0x1f8] sm:$0xf0] }
  0x47   : > { %944 = vmatpush.bf16.msrb.mxu1 %v1567_v60  ;;  %v1603_v57 = vor.u32 %v1774_v50, %v1602_v47  ;;  %v1586_v60 = vld [vmem:[%s1854_s17 + $0x268] sm:$0xf]  ;;  %v1555_v24 = vor.u32 %v1762_v17, %v1554_v16  ;;  %v1300_v31 = vld [vmem:[%s1854_s17 + $0x38] sm:$0xf0]  ;;  %v1527_v35 = vor.u32 %v1752_v27, %v1524_v28  ;;  %v1780_v47 = vld [vmem:[%s1854_s17 + $0x2cc] sm:$0xf] }
  0x48   : > { %914 = vmatmul.bf16.gmra.mxu3 %v2020_v41  ;;  %v1410_v22 = vld [vmem:[%s1854_s17 + $0x108] sm:$0xf]  ;;  %v1652_v34 = vld [vmem:[%s1854_s17 + $0x2f8] sm:$0xf0]  ;;  %v1744_v50 = vld [vmem:[%s1854_s17 + $0x1ac] sm:$0xf] }
  0x49   : > { %981 = vmatpush.bf16.msra.mxu3 %v1331_v54  ;;  %v1475_v54 = vor.u32 %v1742_v40, %v1474_v39  ;;  %v1508_v39 = vld [vmem:[%s1854_s17 + $0x1d8] sm:$0xf0]  ;;  %v1692_v40 = vld [vmem:[%s1854_s17 + $0xc] sm:$0xf]  ;;  %v1819_v27 = vmov 0  }
  0x4a   : > { %926 = vmatpush.bf16.msrb.mxu0 %v1423_v62  ;;  %v1770_v62 = vld [vmem:[%s1854_s17 + $0x274] sm:$0xf0]  ;;  %v1284_v42 = vld [vmem:[%s1854_s17 + $0x18] sm:$0xf0]  ;;  %v1772_v63 = vld [vmem:[%s1854_s17 + $0x28c] sm:$0xf]  ;;  %1809 = vset.pattern.permute.xlu0 %v1819_v27 }
  0x4b   : > { %945 = vmatpush.bf16.msrb.mxu1 %v1551_v8  ;;  %v1587_v4 = vor.u32 %v1770_v62, %v1586_v60  ;;  %v1704_v8 = vld [vmem:[%s1854_s17 + $0x6c] sm:$0xf]  ;;  %v1492_v51 = vld [vmem:[%s1854_s17 + $0x1b8] sm:$0xf0]  ;;  %1810 = vset.pattern.permute.xlu1 %v1819_v27 }
  0x4c   : > { %v1604_v0 = vld [vmem:[%s1854_s17 + $0x298] sm:$0xf0]  ;;  %v1760_v17 = vld [vmem:[%s1854_s17 + $0x22c] sm:$0xf] }
  0x4d   : > { %982 = vmatpush.bf16.msra.mxu3 %v1315_v1  ;;  %v1459_v1 = vor.u32 %v1738_v56, %v1458_v55  ;;  %v1776_v55 = vld [vmem:[%s1854_s17 + $0x2ac] sm:$0xf]  ;;  %v1620_v56 = vld [vmem:[%s1854_s17 + $0x2b8] sm:$0xf0]  ;;  %v1607_v3 = vor.u32 %v1772_v63, %v1604_v0 }
  0x4e   : > { %927 = vmatpush.bf16.msrb.mxu0 %v1407_v9  ;;  %v1332_v9 = vld [vmem:[%s1854_s17 + $0x78] sm:$0xf0]  ;;  %v1623_v60 = vor.u32 %v1776_v55, %v1620_v56 }
  0x4f   : > { %946 = vmatpush.bf16.msrb.mxu1 %v1535_v20  ;;  %v1335_v15 = vor.u32 %v1704_v8, %v1332_v9  ;;  %v1316_v20 = vld [vmem:[%s1854_s17 + $0x58] sm:$0xf0] }
  0x50   : > { %v1319_v25 = vor.u32 %v1700_v19, %v1316_v20  ;;  %v1460_v2 = vld [vmem:[%s1854_s17 + $0x178] sm:$0xf0]  ;;  %v1724_v20 = vld [vmem:[%s1854_s17 + $0x10c] sm:$0xf] }
  0x51   : > { %983 = vmatpush.bf16.msra.mxu3 %v1299_v13  ;;  %928 = vmatmul.bf16.vlgmr.msrb.gmra.mxu0 %v1970_v58  ;;  %v1730_v13 = vld [vmem:[%s1854_s17 + $0x134] sm:$0xf0]  ;;  %v1444_v8 = vld [vmem:[%s1854_s17 + $0x158] sm:$0xf0] }
  0x52   : > { %996 = vmatpush.bf16.msra.mxu0 %v1523_v14  ;;  %947 = vmatmul.bf16.vlgmr.msrb.gmra.mxu1 %v1974_v61  ;;  %v1571_v14 = vor.u32 %v1766_v7, %v1570_v6  ;;  %v1427_v21 = vor.u32 %v1730_v13, %v1426_v12  ;;  %v1588_v6 = vld [vmem:[%s1854_s17 + $0x278] sm:$0xf0]  ;;  %v1732_v7 = vld [vmem:[%s1854_s17 + $0x14c] sm:$0xf] }
  0x53   : > { %1015 = vmatpush.bf16.msra.mxu1 %v1651_v23  ;;  %1674 = vmatmul.msk.bf16.vlgmr.msrb.gmra.mxu2 %vm818_vm0, %v1874_v18  ;;  %v1726_v23 = vld [vmem:[%s1854_s17 + $0x114] sm:$0xf0]  ;;  %v1572_v12 = vld [vmem:[%s1854_s17 + $0x258] sm:$0xf0]  ;;  %v1728_v13 = vld [vmem:[%s1854_s17 + $0x12c] sm:$0xf] }
  0x54   : > { %1117 = vmatpush.bf16.msrb.mxu2 %v1671_v49  ;;  %v1411_v32 = vor.u32 %v1726_v23, %v1410_v22  ;;  %v1636_v49 = vld [vmem:[%s1854_s17 + $0x2d8] sm:$0xf0]  ;;  %v1129_v23 = vld [vmem:[%s2217_s2] sm:$0xff] }
  0x55   : > { %984 = vmatpush.bf16.msra.mxu3 %v1283_v26  ;;  %v1538_v26 = vld [vmem:[%s1854_s17 + $0x208] sm:$0xf]  ;;  %v1639_v52 = vor.u32 %v1780_v47, %v1636_v49  ;;  %v1556_v19 = vld [vmem:[%s1854_s17 + $0x238] sm:$0xf0]  ;;  %1147 = vperm.xlu0 %1809, %v1129_v23  }
  0x56   : > { %997 = vmatpush.bf16.msra.mxu0 %v1507_v29  ;;  %v1758_v29 = vld [vmem:[%s1854_s17 + $0x214] sm:$0xf0]  ;;  %v1559_v22 = vor.u32 %v1760_v17, %v1556_v19 }
  0x57   : > { %1016 = vmatpush.bf16.msra.mxu1 %v1635_v33  ;;  %v1784_v33 = vld [vmem:[%s1854_s17 + $0x2ec] sm:$0xf]  ;;  %v1539_v36 = vor.u32 %v1758_v29, %v1538_v26  ;;  %v1540_v26 = vld [vmem:[%s1854_s17 + $0x218] sm:$0xf0]  ;;  %v1131_v29 = vld [vmem:[%s2217_s2 + $0x10] sm:$0xff] }
  0x58   : > { %985 = vmatmul.bf16.vlgmr.msra.gmra.mxu3 %v1965_v53  ;;  %v1655_v43 = vor.u32 %v1784_v33, %v1652_v34  ;;  %1157 = vperm.xlu1 %1810, %v1131_v29  }
  0x59   : > { %1053 = vmatpush.bf16.msrb.mxu3 %v1399_v30  ;;  %v1696_v30 = vld [vmem:[%s1854_s17 + $0x2c] sm:$0xf] }
  0x5a   : > { %998 = vmatpush.bf16.msra.mxu0 %v1491_v38  ;;  %v1303_v37 = vor.u32 %v1696_v30, %v1300_v31  ;;  %v1748_v38 = vld [vmem:[%s1854_s17 + $0x1cc] sm:$0xf] }
  0x5b   : > { %1017 = vmatpush.bf16.msra.mxu1 %v1619_v44  ;;  %v1511_v44 = vor.u32 %v1748_v38, %v1508_v39  ;;  %v1130_v30 = vld [vmem:[%s2217_s2 + $0x8] sm:$0xff] }
  0x5d   : > { %1054 = vmatpush.bf16.msrb.mxu3 %v1383_v46  ;;  %v1287_v46 = vor.u32 %v1692_v40, %v1284_v42  ;;  %1152 = vperm.xlu0 %1809, %v1130_v30  }
  0x5e   : > { %999 = vmatpush.bf16.msra.mxu0 %v1475_v54  ;;  %v1495_v54 = vor.u32 %v1744_v50, %v1492_v51 }
  0x5f   : > { %1018 = vmatpush.bf16.msra.mxu1 %v1603_v57  ;;  %v1740_v57 = vld [vmem:[%s1854_s17 + $0x18c] sm:$0xf] }
  0x61   : > { %1055 = vmatpush.bf16.msrb.mxu3 %v1367_v59  ;;  %933 = vmatmul.bf16.gmra.mxu0 %v2024_v45  ;;  %v1476_v59 = vld [vmem:[%s1854_s17 + $0x198] sm:$0xf0] }
  0x62   : > { %1000 = vmatpush.bf16.msra.mxu0 %v1459_v1  ;;  %952 = vmatmul.bf16.gmra.mxu1 %v2028_v48  ;;  %v1479_v62 = vor.u32 %v1740_v57, %v1476_v59  ;;  %v1736_v1 = vld [vmem:[%s1854_s17 + $0x16c] sm:$0xf] }
  0x63   : > { %1019 = vmatpush.bf16.msra.mxu1 %v1587_v4  ;;  %1675 = vmatmul.msk.bf16.gmra.mxu2 %vm818_vm0, %v1920_v10  ;;  %v1463_v4 = vor.u32 %v1736_v1, %v1460_v2 }
  0x65   : > { %1056 = vmatpush.bf16.msrb.mxu3 %v1351_v5  ;;  %v1768_v5 = vld [vmem:[%s1854_s17 + $0x26c] sm:$0xf] }
  0x66   : > { %1001 = vmatpush.bf16.msra.mxu0 %v1443_v11  ;;  %v1591_v9 = vor.u32 %v1768_v5, %v1588_v6  ;;  %v1447_v11 = vor.u32 %v1732_v7, %v1444_v8 }
  0x67   : > { %1020 = vmatpush.bf16.msra.mxu1 %v1571_v14  ;;  %v1428_v14 = vld [vmem:[%s1854_s17 + $0x138] sm:$0xf0] }
  0x68   : > { %990 = vmatmul.bf16.gmra.mxu3 %v2020_v41  ;;  %v1431_v16 = vor.u32 %v1728_v13, %v1428_v14 }
  0x69   : > { %1057 = vmatpush.bf16.msrb.mxu3 %v1335_v15 }
  0x6a   : > { %1002 = vmatpush.bf16.msra.mxu0 %v1427_v21  ;;  %v1412_v21 = vld [vmem:[%s1854_s17 + $0x118] sm:$0xf0] }
  0x6b   : > { %1021 = vmatpush.bf16.msra.mxu1 %v1555_v24  ;;  %v1415_v24 = vor.u32 %v1724_v20, %v1412_v21 }
  0x6d   : > { %1058 = vmatpush.bf16.msrb.mxu3 %v1319_v25  ;;  %v1756_v25 = vld [vmem:[%s1854_s17 + $0x20c] sm:$0xf] }
  0x6e   : > { %1003 = vmatpush.bf16.msra.mxu0 %v1411_v32  ;;  %v1543_v28 = vor.u32 %v1756_v25, %v1540_v26 }
  0x6f   : > { %1022 = vmatpush.bf16.msra.mxu1 %v1539_v36 }
  0x71   : > { %1059 = vmatpush.bf16.msrb.mxu3 %v1303_v37  ;;  %1004 = vmatmul.bf16.vlgmr.msra.gmra.mxu0 %v1970_v58 }
  0x72   : > { %1072 = vmatpush.bf16.msrb.mxu0 %v1527_v35  ;;  %1023 = vmatmul.bf16.vlgmr.msra.gmra.mxu1 %v1974_v61 }
  0x73   : > { %1091 = vmatpush.bf16.msrb.mxu1 %v1655_v43  ;;  %1676 = vmatmul.msk.bf16.vlgmr.msra.gmra.mxu2 %vm818_vm0, %v1874_v18 }
  0x75   : > { %1060 = vmatpush.bf16.msrb.mxu3 %v1287_v46 }
  0x76   : > { %1073 = vmatpush.bf16.msrb.mxu0 %v1511_v44 }
  0x77   : > { %1092 = vmatpush.bf16.msrb.mxu1 %v1639_v52 }
  0x78   : > { %1061 = vmatmul.bf16.vlgmr.msrb.gmra.mxu3 %v1965_v53  ;;  %v1764_v53 = vld [vmem:[%s1854_s17 + $0x24c] sm:$0xf] }
  0x79   : > { %1791 = vmatpush.bf16.msra.mxu3 %v1527_v35  ;;  %v1575_v15 = vor.u32 %v1764_v53, %v1572_v12 }
  0x7a   : > { %1074 = vmatpush.bf16.msrb.mxu0 %v1495_v54 }
  0x7b   : > { %1093 = vmatpush.bf16.msrb.mxu1 %v1623_v60 }
  0x7d   : > { %1792 = vmatpush.bf16.msra.mxu3 %v1511_v44 }
  0x7e   : > { %1075 = vmatpush.bf16.msrb.mxu0 %v1479_v62 }
  0x7f   : > { %1094 = vmatpush.bf16.msrb.mxu1 %v1607_v3 }
  0x81   : > { %1793 = vmatpush.bf16.msra.mxu3 %v1495_v54  ;;  %1009 = vmatmul.bf16.gmra.mxu0 %v2024_v45 }
  0x82   : > { %1076 = vmatpush.bf16.msrb.mxu0 %v1463_v4  ;;  %1028 = vmatmul.bf16.gmra.mxu1 %v2028_v48 }
  0x83   : > { %1095 = vmatpush.bf16.msrb.mxu1 %v1591_v9  ;;  %1677 = vmatmul.msk.bf16.gmra.mxu2 %vm818_vm0, %v1920_v10 }
  0x85   : > { %1794 = vmatpush.bf16.msra.mxu3 %v1479_v62 }
  0x86   : > { %1077 = vmatpush.bf16.msrb.mxu0 %v1447_v11 }
  0x87   : > { %1096 = vmatpush.bf16.msrb.mxu1 %v1575_v15 }
  0x88   : > { %1066 = vmatmul.bf16.gmra.mxu3 %v2020_v41  ;;  %v1132_v41 = vld [vmem:[%s2217_s2 + $0x18] sm:$0xff] }
  0x89   : > { %1795 = vmatpush.bf16.msra.mxu3 %v1463_v4  ;;  %1162 = vperm.xlu1 %1810, %v1132_v41  }
  0x8a   : > { %1078 = vmatpush.bf16.msrb.mxu0 %v1431_v16 }
  0x8b   : > { %1097 = vmatpush.bf16.msrb.mxu1 %v1559_v22 }
  0x8d   : > { %1796 = vmatpush.bf16.msra.mxu3 %v1447_v11 }
  0x8e   : > { %1079 = vmatpush.bf16.msrb.mxu0 %v1415_v24 }
  0x8f   : > { %1098 = vmatpush.bf16.msrb.mxu1 %v1543_v28 }
  0x91   : > { %1797 = vmatpush.bf16.msra.mxu3 %v1431_v16  ;;  %1080 = vmatmul.bf16.vlgmr.msrb.gmra.mxu0 %v1970_v58 }
  0x92   : > { %1099 = vmatmul.bf16.vlgmr.msrb.gmra.mxu1 %v1974_v61 }
  0x93   : > { %1678 = vmatmul.msk.bf16.vlgmr.msrb.gmra.mxu2 %vm818_vm0, %v1874_v18 }
  0x95   : > { %1798 = vmatpush.bf16.msra.mxu3 %v1415_v24 }
  0x98   : > { %1085 = vmatmul.bf16.vlgmr.msra.gmra.mxu3 %v2024_v45 }
  0x9b   : > { %v891_v31 = vpop.f32.mrf.mxu3 }
  0xa2   : > { %1104 = vmatmul.bf16.gmra.mxu1 %v2028_v48 }
  0xa3   : > { %v893_v32 = vpop.f32.mrf.mxu3  ;;  %1679 = vmatmul.msk.bf16.gmra.mxu2 %vm818_vm0, %v1920_v10 }
  0xab   : > { %v896_v58 = vpop.f32.mrf.mxu3 }
  0xae   : > { %v834_v61 = vpop.f32.mrf.mxu0 }
  0xaf   : > { %v853_v33 = vpop.f32.mrf.mxu1 }
  0xb0   : > { %v854_v34 = vadd.f32 %v853_v33, %v834_v61 }
  0xb3   : > { %v898_v35 = vpop.f32.mrf.mxu3 }
  0xb6   : > { %v872_v18 = vpop.f32.mrf.mxu2  ;;  %v836_v36 = vpop.f32.mrf.mxu0 }
  0xb7   : > { %v873_v45 = vadd.f32 %v872_v18, %v854_v34  ;;  %v855_v37 = vpop.f32.mrf.mxu1 }
  0xb8   : > { %v856_v38 = vadd.f32 %v855_v37, %v836_v36 }
  0xb9   : > { %v2172_v39 = vadd.f32 %v891_v31, %v873_v45 }
  0xbb   : > { %v910_v40 = vpop.f32.mrf.mxu3 }
  0xbe   : > { %v874_v42 = vpop.f32.mrf.mxu2  ;;  %v839_v43 = vpop.f32.mrf.mxu0 }
  0xbf   : > { %v875_v44 = vadd.f32 %v874_v42, %v856_v38  ;;  %v858_v48 = vpop.f32.mrf.mxu1 }
  0xc0   : > { %v859_v46 = vadd.f32 %v858_v48, %v839_v43 }
  0xc1   : > { %v2174_v47 = vadd.f32 %v893_v32, %v875_v44 }
  0xc3   : > { %v912_v10 = vpop.f32.mrf.mxu3 }
  0xc6   : > { %v877_v49 = vpop.f32.mrf.mxu2  ;;  %v841_v50 = vpop.f32.mrf.mxu0 }
  0xc7   : > { %v878_v51 = vadd.f32 %v877_v49, %v859_v46  ;;  %v860_v52 = vpop.f32.mrf.mxu1 }
  0xc8   : > { %v861_v54 = vadd.f32 %v860_v52, %v841_v50 }
  0xc9   : > { %v2176_v55 = vadd.f32 %v896_v58, %v878_v51 }
  0xcb   : > { %v915_v56 = vpop.f32.mrf.mxu3 }
  0xce   : > { %v879_v57 = vpop.f32.mrf.mxu2  ;;  %v929_v59 = vpop.f32.mrf.mxu0 }
  0xcf   : > { %v880_v60 = vadd.f32 %v879_v57, %v861_v54  ;;  %v930_v62 = vadd.f32 %v929_v59, %v910_v40  ;;  %v948_v63 = vpop.f32.mrf.mxu1  ;;  %v1148_v59 = vpop.permute.xlu0 %1147 }
  0xd1   : > { %v2178_v0 = vadd.f32 %v898_v35, %v880_v60  ;;  %v949_v1 = vadd.f32 %v948_v63, %v930_v62 }
  0xd3   : > { %v917_v2 = vpop.f32.mrf.mxu3 }
  0xd6   : > { %v967_v3 = vpop.f32.mrf.mxu2  ;;  %v931_v4 = vpop.f32.mrf.mxu0 }
  0xd7   : > { %v968_v5 = vadd.f32 %v967_v3, %v949_v1  ;;  %v932_v6 = vadd.f32 %v931_v4, %v912_v10  ;;  %v950_v7 = vpop.f32.mrf.mxu1 }
  0xd9   : > { %v1133_v8 = vmax.f32 %v2172_v39, %v968_v5  ;;  %v951_v9 = vadd.f32 %v950_v7, %v932_v6 }
  0xdb   : > { %v986_v11 = vpop.f32.mrf.mxu3 }
  0xde   : > { %v969_v53 = vpop.f32.mrf.mxu2  ;;  %v934_v12 = vpop.f32.mrf.mxu0 }
  0xdf   : > { %v2181_v13 = vadd.f32 %v969_v53, %v951_v9  ;;  %v935_v14 = vadd.f32 %v934_v12, %v915_v56  ;;  %v953_v15 = vpop.f32.mrf.mxu1 }
  0xe1   : > { %v1134_v16 = vmax.f32 %v2174_v47, %v2181_v13  ;;  %v954_v17 = vadd.f32 %v953_v15, %v935_v14 }
  0xe3   : > { %v988_v19 = vpop.f32.mrf.mxu3 }
  0xe6   : > { %v972_v20 = vpop.f32.mrf.mxu2  ;;  %v936_v21 = vpop.f32.mrf.mxu0 }
  0xe7   : > { %v2185_v22 = vadd.f32 %v972_v20, %v954_v17  ;;  %v937_v23 = vadd.f32 %v936_v21, %v917_v2  ;;  %v955_v24 = vpop.f32.mrf.mxu1 }
  0xe9   : > { %v1135_v25 = vmax.f32 %v2176_v55, %v2185_v22  ;;  %v956_v26 = vadd.f32 %v955_v24, %v937_v23 }
  0xeb   : > { %v991_v27 = vpop.f32.mrf.mxu3 }
  0xee   : > { %v974_v28 = vpop.f32.mrf.mxu2  ;;  %v1005_v29 = vpop.f32.mrf.mxu0 }
  0xef   : > { %v2189_v30 = vadd.f32 %v974_v28, %v956_v26  ;;  %v1024_v41 = vpop.f32.mrf.mxu1  ;;  %v1006_v48 = vadd.f32 %v1005_v29, %v986_v11 }
  0xf1   : > { %v1136_v31 = vmax.f32 %v2178_v0, %v2189_v30  ;;  %v1025_v49 = vadd.f32 %v1024_v41, %v1006_v48 }
  0xf3   : > { %v993_v32 = vpop.f32.mrf.mxu3 }
  0xf6   : > { %v1043_v58 = vpop.f32.mrf.mxu2  ;;  %v1007_v61 = vpop.f32.mrf.mxu0 }
  0xf7   : > { %v1026_v33 = vpop.f32.mrf.mxu1  ;;  %v1044_v54 = vadd.f32 %v1043_v58, %v1025_v49  ;;  %v1008_v60 = vadd.f32 %v1007_v61, %v988_v19  ;;  %v1158_v58 = vpop.permute.xlu1 %1157 }
  0xf9   : > { %v1027_v2 = vadd.f32 %v1026_v33, %v1008_v60 }
  0xfb   : > { %v1062_v34 = vpop.f32.mrf.mxu3 }
  0xfe   : > { %v1045_v35 = vpop.f32.mrf.mxu2  ;;  %v1010_v18 = vpop.f32.mrf.mxu0 }
  0xff   : > { %v1029_v36 = vpop.f32.mrf.mxu1  ;;  %v1046_v7 = vadd.f32 %v1045_v35, %v1027_v2  ;;  %v1011_v12 = vadd.f32 %v1010_v18, %v991_v27 }
 0x101   : > { %v1030_v19 = vadd.f32 %v1029_v36, %v1011_v12 }
 0x103   : > { %v1064_v45 = vpop.f32.mrf.mxu3 }
 0x106   : > { %v1048_v37 = vpop.f32.mrf.mxu2  ;;  %v1012_v38 = vpop.f32.mrf.mxu0 }
 0x107   : > { %v1031_v39 = vpop.f32.mrf.mxu1  ;;  %v1049_v24 = vadd.f32 %v1048_v37, %v1030_v19  ;;  %v1013_v41 = vadd.f32 %v1012_v38, %v993_v32  ;;  %v1163_v38 = vpop.permute.xlu1 %1162 }
 0x109   : > { %v1032_v13 = vadd.f32 %v1031_v39, %v1013_v41 }
 0x10b   : > { %v1067_v40 = vpop.f32.mrf.mxu3 }
 0x10e   : > { %v1050_v42 = vpop.f32.mrf.mxu2  ;;  %v1081_v43 = vpop.f32.mrf.mxu0 }
 0x10f   : > { %v1100_v44 = vpop.f32.mrf.mxu1  ;;  %v1082_v46 = vadd.f32 %v1081_v43, %v1062_v34  ;;  %v1051_v18 = vadd.f32 %v1050_v42, %v1032_v13 }
 0x111   : > { %v1101_v50 = vadd.f32 %v1100_v44, %v1082_v46 }
 0x113   : > { %v1069_v10 = vpop.f32.mrf.mxu3 }
 0x116   : > { %v1119_v51 = vpop.f32.mrf.mxu2  ;;  %v1083_v52 = vpop.f32.mrf.mxu0 }
 0x117   : > { %v1120_v56 = vadd.f32 %v1119_v51, %v1101_v50  ;;  %v1102_v57 = vpop.f32.mrf.mxu1  ;;  %v1084_v63 = vadd.f32 %v1083_v52, %v1064_v45 }
 0x119   : > { %v1137_v62 = vmax.f32 %v1044_v54, %v1120_v56  ;;  %v1103_v3 = vadd.f32 %v1102_v57, %v1084_v63 }
 0x11b   : > { %v1141_v1 = vmax.f32 %v1133_v8, %v1137_v62  ;;  %v1086_v5 = vpop.f32.mrf.mxu3  ;;  %v1153_v8 = vpop.permute.xlu0 %1152 }
 0x11c   : > { %v1087_v15 = vadd.f32 %v1086_v5, %v1067_v40 }
 0x11d   : > { %v1165_v4 = vadd.f32 %v1148_v59, %v1141_v1 }
 0x11e   : > { %v1121_v6 = vpop.f32.mrf.mxu2 }
 0x11f   : > { %v1169_v9 = vmax.f32 %v1165_v4, 0.0  ;;  %v1122_v11 = vadd.f32 %v1121_v6, %v1103_v3  ;;  %v1105_v53 = vpop.f32.mrf.mxu1 }
 0x120   : > { %v1106_v20 = vadd.f32 %v1105_v53, %v1087_v15 }
 0x121   : > { %1173 = vst [vmem:[%s2197_s9] sm:$0xff] %v1169_v9  ;;  %v1138_v14 = vmax.f32 %v1046_v7, %v1122_v11 }
 0x123   : > { %v1142_v17 = vmax.f32 %v1134_v16, %v1138_v14  ;;  %v1088_v29 = vpop.f32.mrf.mxu3 }
 0x124   : > { %v1089_v33 = vadd.f32 %v1088_v29, %v1069_v10 }
 0x125   : > { %v1166_v21 = vadd.f32 %v1153_v8, %v1142_v17 }
 0x126   : > { %v1124_v23 = vpop.f32.mrf.mxu2 }
 0x127   : > { %v1170_v26 = vmax.f32 %v1166_v21, 0.0  ;;  %v1125_v28 = vadd.f32 %v1124_v23, %v1106_v20  ;;  %v1107_v61 = vpop.f32.mrf.mxu1 }
 0x128   : > { %v1108_v34 = vadd.f32 %v1107_v61, %v1089_v33 }
 0x129   : > { %1174 = vst [vmem:[%s2197_s9 + $0x8] sm:$0xff] %v1170_v26  ;;  %v1139_v27 = vmax.f32 %v1049_v24, %v1125_v28 }
 0x12b   : > { %v1143_v47 = vmax.f32 %v1135_v25, %v1139_v27 }
 0x12d   : > { %v1167_v16 = vadd.f32 %v1158_v58, %v1143_v47 }
 0x12e   : > { %v1126_v35 = vpop.f32.mrf.mxu2 }
 0x12f   : > { %v1171_v36 = vmax.f32 %v1167_v16, 0.0  ;;  %v1127_v45 = vadd.f32 %v1126_v35, %v1108_v34 }
 0x131   : > { %1175 = vst [vmem:[%s2197_s9 + $0x10] sm:$0xff] %v1171_v36  ;;  %v1140_v37 = vmax.f32 %v1051_v18, %v1127_v45 }
 0x133   : > { %v1144_v32 = vmax.f32 %v1136_v31, %v1140_v37 }
 0x135   : > { %v1168_v40 = vadd.f32 %v1163_v38, %v1144_v32 }
 0x137   : > { %v1172_v43 = vmax.f32 %v1168_v40, 0.0 }
 0x139   : > { %1176 = vst [vmem:[%s2197_s9 + $0x18] sm:$0xff] %v1172_v43 }
 0x13a PF: > { %s13_s12 = sadd.s32 1, %s1817_s12  }
 0x13b   : > { %p10_p4 = scmp.ge.s32.totalorder %s13_s12, 4  }
 0x13d   :  { %12 = sbr.rel (!%p10_p4) target bundleno = 1 (0x1), region = 62 }

// kernel: convnet_forward.5
= control target key start
LH: loop header
LB: loop body
LE: loop exit
PB: predicated region body
PF: predicated region fallthrough
CT: control target
= control target key end

     0   :  { %s1194_s1 = inlined_call_operand.vmem [shape: f32[1664,128], index: 1, kind: input, shape index: {}]   ;;  %s1195_s0 = inlined_call_operand.vmem [shape: f32[8,1664], index: 0, kind: input, shape index: {}]   ;;  %s1196_s2 = inlined_call_operand.vmem [shape: f32[1,128], index: 2, kind: input, shape index: {}]   ;;  %s1197_s3 = inlined_call_operand.vmem [shape: f32[8,128], index: 3, kind: output, shape index: {}]  }
   0x1   :  { %v42_v0 = vld [vmem:[%s1194_s1 + $0x78] sm:$0xff]  ;;  %v41_v2 = vld [vmem:[%s1194_s1 + $0x70] sm:$0xff]  ;;  %v40_v6 = vld [vmem:[%s1194_s1 + $0x68] sm:$0xff] }
   0x2   :  { %v74_v1 = vld [vmem:[%s1194_s1 + $0x178] sm:$0xff]  ;;  %239 = vmatpush.msra.mxu0 %v42_v0  ;;  %v73_v4 = vld [vmem:[%s1194_s1 + $0x170] sm:$0xff]  ;;  %v72_v8 = vld [vmem:[%s1194_s1 + $0x168] sm:$0xff] }
   0x3   :  { %279 = vmatpush.msra.mxu2 %v74_v1  ;;  %v58_v3 = vld [vmem:[%s1194_s1 + $0xf8] sm:$0xff]  ;;  %v57_v7 = vld [vmem:[%s1194_s1 + $0xf0] sm:$0xff]  ;;  %v56_v10 = vld [vmem:[%s1194_s1 + $0xe8] sm:$0xff] }
   0x4   :  { %v90_v5 = vld [vmem:[%s1194_s1 + $0x1f8] sm:$0xff]  ;;  %259 = vmatpush.msra.mxu1 %v58_v3  ;;  %240 = vmatpush.msra.mxu0 %v41_v2  ;;  %v89_v9 = vld [vmem:[%s1194_s1 + $0x1f0] sm:$0xff]  ;;  %v39_v11 = vld [vmem:[%s1194_s1 + $0x60] sm:$0xff] }
   0x5   :  { %299 = vmatpush.msra.mxu3 %v90_v5  ;;  %280 = vmatpush.msra.mxu2 %v73_v4  ;;  %v71_v12 = vld [vmem:[%s1194_s1 + $0x160] sm:$0xff]  ;;  %v88_v13 = vld [vmem:[%s1194_s1 + $0x1e8] sm:$0xff]  ;;  %v38_v16 = vld [vmem:[%s1194_s1 + $0x58] sm:$0xff] }
   0x6   :  { %260 = vmatpush.msra.mxu1 %v57_v7  ;;  %241 = vmatpush.msra.mxu0 %v40_v6  ;;  %v55_v14 = vld [vmem:[%s1194_s1 + $0xe0] sm:$0xff]  ;;  %v70_v17 = vld [vmem:[%s1194_s1 + $0x158] sm:$0xff]  ;;  %v37_v20 = vld [vmem:[%s1194_s1 + $0x50] sm:$0xff] }
   0x7   :  { %300 = vmatpush.msra.mxu3 %v89_v9  ;;  %281 = vmatpush.msra.mxu2 %v72_v8  ;;  %v87_v15 = vld [vmem:[%s1194_s1 + $0x1e0] sm:$0xff]  ;;  %v54_v18 = vld [vmem:[%s1194_s1 + $0xd8] sm:$0xff]  ;;  %v69_v21 = vld [vmem:[%s1194_s1 + $0x150] sm:$0xff] }
   0x8   :  { %261 = vmatpush.msra.mxu1 %v56_v10  ;;  %242 = vmatpush.msra.mxu0 %v39_v11  ;;  %v86_v19 = vld [vmem:[%s1194_s1 + $0x1d8] sm:$0xff]  ;;  %v53_v22 = vld [vmem:[%s1194_s1 + $0xd0] sm:$0xff]  ;;  %v36_v24 = vld [vmem:[%s1194_s1 + $0x48] sm:$0xff] }
   0x9   :  { %301 = vmatpush.msra.mxu3 %v88_v13  ;;  %282 = vmatpush.msra.mxu2 %v71_v12  ;;  %v85_v23 = vld [vmem:[%s1194_s1 + $0x1d0] sm:$0xff]  ;;  %v68_v25 = vld [vmem:[%s1194_s1 + $0x148] sm:$0xff]  ;;  %v35_v28 = vld [vmem:[%s1194_s1 + $0x40] sm:$0xff] }
   0xa   :  { %262 = vmatpush.msra.mxu1 %v55_v14  ;;  %243 = vmatpush.msra.mxu0 %v38_v16  ;;  %v52_v26 = vld [vmem:[%s1194_s1 + $0xc8] sm:$0xff]  ;;  %v67_v29 = vld [vmem:[%s1194_s1 + $0x140] sm:$0xff]  ;;  %v34_v32 = vld [vmem:[%s1194_s1 + $0x38] sm:$0xff] }
   0xb   :  { %302 = vmatpush.msra.mxu3 %v87_v15  ;;  %283 = vmatpush.msra.mxu2 %v70_v17  ;;  %v84_v27 = vld [vmem:[%s1194_s1 + $0x1c8] sm:$0xff]  ;;  %v51_v30 = vld [vmem:[%s1194_s1 + $0xc0] sm:$0xff]  ;;  %v66_v33 = vld [vmem:[%s1194_s1 + $0x138] sm:$0xff] }
   0xc   :  { %263 = vmatpush.msra.mxu1 %v54_v18  ;;  %244 = vmatpush.msra.mxu0 %v37_v20  ;;  %v83_v31 = vld [vmem:[%s1194_s1 + $0x1c0] sm:$0xff]  ;;  %v50_v34 = vld [vmem:[%s1194_s1 + $0xb8] sm:$0xff]  ;;  %v33_v36 = vld [vmem:[%s1194_s1 + $0x30] sm:$0xff] }
   0xd   :  { %303 = vmatpush.msra.mxu3 %v86_v19  ;;  %284 = vmatpush.msra.mxu2 %v69_v21  ;;  %v82_v35 = vld [vmem:[%s1194_s1 + $0x1b8] sm:$0xff]  ;;  %v65_v37 = vld [vmem:[%s1194_s1 + $0x130] sm:$0xff]  ;;  %v32_v40 = vld [vmem:[%s1194_s1 + $0x28] sm:$0xff] }
   0xe   :  { %264 = vmatpush.msra.mxu1 %v53_v22  ;;  %245 = vmatpush.msra.mxu0 %v36_v24  ;;  %v49_v38 = vld [vmem:[%s1194_s1 + $0xb0] sm:$0xff]  ;;  %v64_v41 = vld [vmem:[%s1194_s1 + $0x128] sm:$0xff]  ;;  %v31_v44 = vld [vmem:[%s1194_s1 + $0x20] sm:$0xff] }
   0xf   :  { %304 = vmatpush.msra.mxu3 %v85_v23  ;;  %285 = vmatpush.msra.mxu2 %v68_v25  ;;  %v81_v39 = vld [vmem:[%s1194_s1 + $0x1b0] sm:$0xff]  ;;  %v48_v42 = vld [vmem:[%s1194_s1 + $0xa8] sm:$0xff]  ;;  %v63_v45 = vld [vmem:[%s1194_s1 + $0x120] sm:$0xff] }
  0x10   :  { %265 = vmatpush.msra.mxu1 %v52_v26  ;;  %246 = vmatpush.msra.mxu0 %v35_v28  ;;  %v80_v43 = vld [vmem:[%s1194_s1 + $0x1a8] sm:$0xff]  ;;  %v47_v46 = vld [vmem:[%s1194_s1 + $0xa0] sm:$0xff]  ;;  %v30_v48 = vld [vmem:[%s1194_s1 + $0x18] sm:$0xff] }
  0x11   :  { %305 = vmatpush.msra.mxu3 %v84_v27  ;;  %286 = vmatpush.msra.mxu2 %v67_v29  ;;  %v79_v47 = vld [vmem:[%s1194_s1 + $0x1a0] sm:$0xff]  ;;  %v62_v49 = vld [vmem:[%s1194_s1 + $0x118] sm:$0xff]  ;;  %v29_v52 = vld [vmem:[%s1194_s1 + $0x10] sm:$0xff] }
  0x12   :  { %266 = vmatpush.msra.mxu1 %v51_v30  ;;  %247 = vmatpush.msra.mxu0 %v34_v32  ;;  %v46_v50 = vld [vmem:[%s1194_s1 + $0x98] sm:$0xff]  ;;  %v61_v53 = vld [vmem:[%s1194_s1 + $0x110] sm:$0xff]  ;;  %v28_v56 = vld [vmem:[%s1194_s1 + $0x8] sm:$0xff] }
  0x13   :  { %306 = vmatpush.msra.mxu3 %v83_v31  ;;  %287 = vmatpush.msra.mxu2 %v66_v33  ;;  %v78_v51 = vld [vmem:[%s1194_s1 + $0x198] sm:$0xff]  ;;  %v45_v54 = vld [vmem:[%s1194_s1 + $0x90] sm:$0xff]  ;;  %v60_v57 = vld [vmem:[%s1194_s1 + $0x108] sm:$0xff] }
  0x14   :  { %267 = vmatpush.msra.mxu1 %v50_v34  ;;  %248 = vmatpush.msra.mxu0 %v33_v36  ;;  %v77_v55 = vld [vmem:[%s1194_s1 + $0x190] sm:$0xff]  ;;  %v44_v58 = vld [vmem:[%s1194_s1 + $0x88] sm:$0xff]  ;;  %v27_v60 = vld [vmem:[%s1194_s1] sm:$0xff] }
  0x15   :  { %307 = vmatpush.msra.mxu3 %v82_v35  ;;  %288 = vmatpush.msra.mxu2 %v65_v37  ;;  %v76_v59 = vld [vmem:[%s1194_s1 + $0x188] sm:$0xff]  ;;  %v59_v61 = vld [vmem:[%s1194_s1 + $0x100] sm:$0xff]  ;;  %v106_v62 = vld [vmem:[%s1194_s1 + $0x278] sm:$0xff] }
  0x16   :  { %268 = vmatpush.msra.mxu1 %v49_v38  ;;  %249 = vmatpush.msra.mxu0 %v32_v40  ;;  %v138_v63 = vld [vmem:[%s1194_s1 + $0x378] sm:$0xff]  ;;  %v43_v0 = vld [vmem:[%s1194_s1 + $0x80] sm:$0xff]  ;;  %v105_v2 = vld [vmem:[%s1194_s1 + $0x270] sm:$0xff] }
  0x17   :  { %308 = vmatpush.msra.mxu3 %v81_v39  ;;  %289 = vmatpush.msra.mxu2 %v64_v41  ;;  %v75_v1 = vld [vmem:[%s1194_s1 + $0x180] sm:$0xff]  ;;  %v122_v3 = vld [vmem:[%s1194_s1 + $0x2f8] sm:$0xff]  ;;  %v137_v4 = vld [vmem:[%s1194_s1 + $0x370] sm:$0xff] }
  0x18   :  { %269 = vmatpush.msra.mxu1 %v48_v42  ;;  %250 = vmatpush.msra.mxu0 %v31_v44  ;;  %v154_v5 = vld [vmem:[%s1194_s1 + $0x3f8] sm:$0xff]  ;;  %v104_v6 = vld [vmem:[%s1194_s1 + $0x268] sm:$0xff]  ;;  %v121_v7 = vld [vmem:[%s1194_s1 + $0x2f0] sm:$0xff] }
  0x19   :  { %309 = vmatpush.msra.mxu3 %v80_v43  ;;  %290 = vmatpush.msra.mxu2 %v63_v45  ;;  %v136_v8 = vld [vmem:[%s1194_s1 + $0x368] sm:$0xff]  ;;  %v153_v9 = vld [vmem:[%s1194_s1 + $0x3f0] sm:$0xff]  ;;  %v103_v10 = vld [vmem:[%s1194_s1 + $0x260] sm:$0xff] }
  0x1a   :  { %270 = vmatpush.msra.mxu1 %v47_v46  ;;  %251 = vmatpush.msra.mxu0 %v30_v48  ;;  %v120_v11 = vld [vmem:[%s1194_s1 + $0x2e8] sm:$0xff]  ;;  %v135_v12 = vld [vmem:[%s1194_s1 + $0x360] sm:$0xff]  ;;  %v102_v14 = vld [vmem:[%s1194_s1 + $0x258] sm:$0xff] }
  0x1b   :  { %310 = vmatpush.msra.mxu3 %v79_v47  ;;  %291 = vmatpush.msra.mxu2 %v62_v49  ;;  %v152_v13 = vld [vmem:[%s1194_s1 + $0x3e8] sm:$0xff]  ;;  %v119_v15 = vld [vmem:[%s1194_s1 + $0x2e0] sm:$0xff]  ;;  %v134_v16 = vld [vmem:[%s1194_s1 + $0x358] sm:$0xff] }
  0x1c   :  { %271 = vmatpush.msra.mxu1 %v46_v50  ;;  %252 = vmatpush.msra.mxu0 %v29_v52  ;;  %v151_v17 = vld [vmem:[%s1194_s1 + $0x3e0] sm:$0xff]  ;;  %v101_v18 = vld [vmem:[%s1194_s1 + $0x250] sm:$0xff]  ;;  %v118_v19 = vld [vmem:[%s1194_s1 + $0x2d8] sm:$0xff] }
  0x1d   :  { %311 = vmatpush.msra.mxu3 %v78_v51  ;;  %292 = vmatpush.msra.mxu2 %v61_v53  ;;  %v133_v20 = vld [vmem:[%s1194_s1 + $0x350] sm:$0xff]  ;;  %v150_v21 = vld [vmem:[%s1194_s1 + $0x3d8] sm:$0xff]  ;;  %v100_v22 = vld [vmem:[%s1194_s1 + $0x248] sm:$0xff] }
  0x1e   :  { %272 = vmatpush.msra.mxu1 %v45_v54  ;;  %253 = vmatpush.msra.mxu0 %v28_v56  ;;  %v117_v23 = vld [vmem:[%s1194_s1 + $0x2d0] sm:$0xff]  ;;  %v132_v24 = vld [vmem:[%s1194_s1 + $0x348] sm:$0xff]  ;;  %v99_v26 = vld [vmem:[%s1194_s1 + $0x240] sm:$0xff] }
  0x1f   :  { %312 = vmatpush.msra.mxu3 %v77_v55  ;;  %293 = vmatpush.msra.mxu2 %v60_v57  ;;  %v149_v25 = vld [vmem:[%s1194_s1 + $0x3d0] sm:$0xff]  ;;  %v116_v27 = vld [vmem:[%s1194_s1 + $0x2c8] sm:$0xff]  ;;  %v131_v28 = vld [vmem:[%s1194_s1 + $0x340] sm:$0xff] }
  0x20   :  { %273 = vmatpush.msra.mxu1 %v44_v58  ;;  %254 = vmatpush.msra.mxu0 %v27_v60  ;;  %v148_v29 = vld [vmem:[%s1194_s1 + $0x3c8] sm:$0xff]  ;;  %v98_v30 = vld [vmem:[%s1194_s1 + $0x238] sm:$0xff]  ;;  %v115_v31 = vld [vmem:[%s1194_s1 + $0x2c0] sm:$0xff] }
  0x21   :  { %313 = vmatpush.msra.mxu3 %v76_v59  ;;  %294 = vmatpush.msra.mxu2 %v59_v61  ;;  %v130_v32 = vld [vmem:[%s1194_s1 + $0x338] sm:$0xff]  ;;  %v147_v33 = vld [vmem:[%s1194_s1 + $0x3c0] sm:$0xff]  ;;  %v97_v34 = vld [vmem:[%s1194_s1 + $0x230] sm:$0xff] }
  0x22   :  { %319 = vmatpush.msrb.mxu0 %v106_v62  ;;  %274 = vmatpush.msra.mxu1 %v43_v0  ;;  %v114_v35 = vld [vmem:[%s1194_s1 + $0x2b8] sm:$0xff]  ;;  %v129_v36 = vld [vmem:[%s1194_s1 + $0x330] sm:$0xff]  ;;  %v96_v38 = vld [vmem:[%s1194_s1 + $0x228] sm:$0xff] }
  0x23   :  { %359 = vmatpush.msrb.mxu2 %v138_v63  ;;  %314 = vmatpush.msra.mxu3 %v75_v1  ;;  %v146_v37 = vld [vmem:[%s1194_s1 + $0x3b8] sm:$0xff]  ;;  %v113_v39 = vld [vmem:[%s1194_s1 + $0x2b0] sm:$0xff]  ;;  %v128_v40 = vld [vmem:[%s1194_s1 + $0x328] sm:$0xff] }
  0x24   :  { %320 = vmatpush.msrb.mxu0 %v105_v2  ;;  %339 = vmatpush.msrb.mxu1 %v122_v3  ;;  %v145_v41 = vld [vmem:[%s1194_s1 + $0x3b0] sm:$0xff]  ;;  %v95_v42 = vld [vmem:[%s1194_s1 + $0x220] sm:$0xff]  ;;  %v112_v43 = vld [vmem:[%s1194_s1 + $0x2a8] sm:$0xff] }
  0x25   :  { %360 = vmatpush.msrb.mxu2 %v137_v4  ;;  %379 = vmatpush.msrb.mxu3 %v154_v5  ;;  %v127_v44 = vld [vmem:[%s1194_s1 + $0x320] sm:$0xff]  ;;  %v144_v45 = vld [vmem:[%s1194_s1 + $0x3a8] sm:$0xff]  ;;  %v94_v46 = vld [vmem:[%s1194_s1 + $0x218] sm:$0xff] }
  0x26   :  { %321 = vmatpush.msrb.mxu0 %v104_v6  ;;  %340 = vmatpush.msrb.mxu1 %v121_v7  ;;  %v111_v47 = vld [vmem:[%s1194_s1 + $0x2a0] sm:$0xff]  ;;  %v126_v48 = vld [vmem:[%s1194_s1 + $0x318] sm:$0xff]  ;;  %v93_v50 = vld [vmem:[%s1194_s1 + $0x210] sm:$0xff] }
  0x27   :  { %361 = vmatpush.msrb.mxu2 %v136_v8  ;;  %380 = vmatpush.msrb.mxu3 %v153_v9  ;;  %v143_v49 = vld [vmem:[%s1194_s1 + $0x3a0] sm:$0xff]  ;;  %v110_v51 = vld [vmem:[%s1194_s1 + $0x298] sm:$0xff]  ;;  %v125_v52 = vld [vmem:[%s1194_s1 + $0x310] sm:$0xff] }
  0x28   :  { %322 = vmatpush.msrb.mxu0 %v103_v10  ;;  %341 = vmatpush.msrb.mxu1 %v120_v11  ;;  %v142_v53 = vld [vmem:[%s1194_s1 + $0x398] sm:$0xff]  ;;  %v92_v54 = vld [vmem:[%s1194_s1 + $0x208] sm:$0xff]  ;;  %v109_v55 = vld [vmem:[%s1194_s1 + $0x290] sm:$0xff] }
  0x29   :  { %362 = vmatpush.msrb.mxu2 %v135_v12  ;;  %381 = vmatpush.msrb.mxu3 %v152_v13  ;;  %v124_v56 = vld [vmem:[%s1194_s1 + $0x308] sm:$0xff]  ;;  %v141_v57 = vld [vmem:[%s1194_s1 + $0x390] sm:$0xff]  ;;  %v91_v59 = vld [vmem:[%s1194_s1 + $0x200] sm:$0xff] }
  0x2a   :  { %323 = vmatpush.msrb.mxu0 %v102_v14  ;;  %342 = vmatpush.msrb.mxu1 %v119_v15  ;;  %v16_v58 = vld [vmem:[%s1195_s0 + $0x10] sm:$0xff]  ;;  %v108_v60 = vld [vmem:[%s1194_s1 + $0x288] sm:$0xff]  ;;  %v123_v61 = vld [vmem:[%s1194_s1 + $0x300] sm:$0xff] }
  0x2b   :  { %363 = vmatpush.msrb.mxu2 %v134_v16  ;;  %382 = vmatpush.msrb.mxu3 %v151_v17  ;;  %v140_v62 = vld [vmem:[%s1194_s1 + $0x388] sm:$0xff]  ;;  %v14_v63 = vld [vmem:[%s1195_s0] sm:$0xff]  ;;  %v17_v0 = vld [vmem:[%s1195_s0 + $0x18] sm:$0xff] }
  0x2c   :  { %324 = vmatpush.msrb.mxu0 %v101_v18  ;;  %343 = vmatpush.msrb.mxu1 %v118_v19  ;;  %v170_v1 = vld [vmem:[%s1194_s1 + $0x478] sm:$0xff]  ;;  %v107_v3 = vld [vmem:[%s1194_s1 + $0x280] sm:$0xff]  ;;  %v15_v5 = vld [vmem:[%s1195_s0 + $0x8] sm:$0xff] }
  0x2d   :  { %364 = vmatpush.msrb.mxu2 %v133_v20  ;;  %383 = vmatpush.msrb.mxu3 %v150_v21  ;;  %v202_v2 = vld [vmem:[%s1194_s1 + $0x578] sm:$0xff]  ;;  %v139_v4 = vld [vmem:[%s1194_s1 + $0x380] sm:$0xff]  ;;  %v169_v6 = vld [vmem:[%s1194_s1 + $0x470] sm:$0xff] }
  0x2e   :  { %325 = vmatpush.msrb.mxu0 %v100_v22  ;;  %344 = vmatpush.msrb.mxu1 %v117_v23  ;;  %v186_v7 = vld [vmem:[%s1194_s1 + $0x4f8] sm:$0xff]  ;;  %v201_v8 = vld [vmem:[%s1194_s1 + $0x570] sm:$0xff]  ;;  %v168_v10 = vld [vmem:[%s1194_s1 + $0x468] sm:$0xff] }
  0x2f   :  { %365 = vmatpush.msrb.mxu2 %v132_v24  ;;  %384 = vmatpush.msrb.mxu3 %v149_v25  ;;  %v218_v9 = vld [vmem:[%s1194_s1 + $0x5f8] sm:$0xff]  ;;  %v185_v11 = vld [vmem:[%s1194_s1 + $0x4f0] sm:$0xff]  ;;  %v200_v12 = vld [vmem:[%s1194_s1 + $0x568] sm:$0xff] }
  0x30   :  { %326 = vmatpush.msrb.mxu0 %v99_v26  ;;  %345 = vmatpush.msrb.mxu1 %v116_v27  ;;  %v217_v13 = vld [vmem:[%s1194_s1 + $0x5f0] sm:$0xff]  ;;  %v167_v15 = vld [vmem:[%s1194_s1 + $0x460] sm:$0xff]  ;;  %v184_v16 = vld [vmem:[%s1194_s1 + $0x4e8] sm:$0xff] }
  0x31   :  { %366 = vmatpush.msrb.mxu2 %v131_v28  ;;  %385 = vmatpush.msrb.mxu3 %v148_v29  ;;  %v20_v14 = vld [vmem:[%s1195_s0 + $0x30] sm:$0xff]  ;;  %v199_v17 = vld [vmem:[%s1194_s1 + $0x560] sm:$0xff]  ;;  %v216_v18 = vld [vmem:[%s1194_s1 + $0x5e8] sm:$0xff] }
  0x32   :  { %327 = vmatpush.msrb.mxu0 %v98_v30  ;;  %346 = vmatpush.msrb.mxu1 %v115_v31  ;;  %v18_v19 = vld [vmem:[%s1195_s0 + $0x20] sm:$0xff]  ;;  %v21_v20 = vld [vmem:[%s1195_s0 + $0x38] sm:$0xff]  ;;  %v19_v25 = vld [vmem:[%s1195_s0 + $0x28] sm:$0xff] }
  0x33   :  { %367 = vmatpush.msrb.mxu2 %v130_v32  ;;  %386 = vmatpush.msrb.mxu3 %v147_v33  ;;  %v166_v21 = vld [vmem:[%s1194_s1 + $0x458] sm:$0xff]  ;;  %v183_v22 = vld [vmem:[%s1194_s1 + $0x4e0] sm:$0xff]  ;;  %v165_v26 = vld [vmem:[%s1194_s1 + $0x450] sm:$0xff] }
  0x34   :  { %328 = vmatpush.msrb.mxu0 %v97_v34  ;;  %347 = vmatpush.msrb.mxu1 %v114_v35  ;;  %v198_v23 = vld [vmem:[%s1194_s1 + $0x558] sm:$0xff]  ;;  %v215_v24 = vld [vmem:[%s1194_s1 + $0x5e0] sm:$0xff]  ;;  %v197_v28 = vld [vmem:[%s1194_s1 + $0x550] sm:$0xff] }
  0x35   :  { %368 = vmatpush.msrb.mxu2 %v129_v36  ;;  %387 = vmatpush.msrb.mxu3 %v146_v37  ;;  %v182_v27 = vld [vmem:[%s1194_s1 + $0x4d8] sm:$0xff]  ;;  %v164_v30 = vld [vmem:[%s1194_s1 + $0x448] sm:$0xff]  ;;  %v181_v31 = vld [vmem:[%s1194_s1 + $0x4d0] sm:$0xff] }
  0x36   :  { %329 = vmatpush.msrb.mxu0 %v96_v38  ;;  %348 = vmatpush.msrb.mxu1 %v113_v39  ;;  %v214_v29 = vld [vmem:[%s1194_s1 + $0x5d8] sm:$0xff]  ;;  %v196_v32 = vld [vmem:[%s1194_s1 + $0x548] sm:$0xff]  ;;  %v213_v33 = vld [vmem:[%s1194_s1 + $0x5d0] sm:$0xff] }
  0x37   :  { %369 = vmatpush.msrb.mxu2 %v128_v40  ;;  %388 = vmatpush.msrb.mxu3 %v145_v41  ;;  %v163_v34 = vld [vmem:[%s1194_s1 + $0x440] sm:$0xff]  ;;  %v180_v35 = vld [vmem:[%s1194_s1 + $0x4c8] sm:$0xff]  ;;  %v162_v38 = vld [vmem:[%s1194_s1 + $0x438] sm:$0xff] }
  0x38   :  { %330 = vmatpush.msrb.mxu0 %v95_v42  ;;  %349 = vmatpush.msrb.mxu1 %v112_v43  ;;  %v195_v36 = vld [vmem:[%s1194_s1 + $0x540] sm:$0xff]  ;;  %v212_v37 = vld [vmem:[%s1194_s1 + $0x5c8] sm:$0xff]  ;;  %v194_v40 = vld [vmem:[%s1194_s1 + $0x538] sm:$0xff] }
  0x39   :  { %370 = vmatpush.msrb.mxu2 %v127_v44  ;;  %389 = vmatpush.msrb.mxu3 %v144_v45  ;;  %v179_v39 = vld [vmem:[%s1194_s1 + $0x4c0] sm:$0xff]  ;;  %v161_v42 = vld [vmem:[%s1194_s1 + $0x430] sm:$0xff]  ;;  %v178_v43 = vld [vmem:[%s1194_s1 + $0x4b8] sm:$0xff] }
  0x3a   :  { %331 = vmatpush.msrb.mxu0 %v94_v46  ;;  %350 = vmatpush.msrb.mxu1 %v111_v47  ;;  %v211_v41 = vld [vmem:[%s1194_s1 + $0x5c0] sm:$0xff]  ;;  %v193_v44 = vld [vmem:[%s1194_s1 + $0x530] sm:$0xff]  ;;  %v210_v45 = vld [vmem:[%s1194_s1 + $0x5b8] sm:$0xff] }
  0x3b   :  { %371 = vmatpush.msrb.mxu2 %v126_v48  ;;  %390 = vmatpush.msrb.mxu3 %v143_v49  ;;  %v160_v46 = vld [vmem:[%s1194_s1 + $0x428] sm:$0xff]  ;;  %v177_v47 = vld [vmem:[%s1194_s1 + $0x4b0] sm:$0xff] }
  0x3c   :  { %332 = vmatpush.msrb.mxu0 %v93_v50  ;;  %351 = vmatpush.msrb.mxu1 %v110_v51  ;;  %v192_v48 = vld [vmem:[%s1194_s1 + $0x528] sm:$0xff]  ;;  %v209_v49 = vld [vmem:[%s1194_s1 + $0x5b0] sm:$0xff]  ;;  %v159_v50 = vld [vmem:[%s1194_s1 + $0x420] sm:$0xff] }
  0x3d   :  { %372 = vmatpush.msrb.mxu2 %v125_v52  ;;  %391 = vmatpush.msrb.mxu3 %v142_v53  ;;  %v176_v51 = vld [vmem:[%s1194_s1 + $0x4a8] sm:$0xff]  ;;  %v191_v52 = vld [vmem:[%s1194_s1 + $0x520] sm:$0xff] }
  0x3e   :  { %333 = vmatpush.msrb.mxu0 %v92_v54  ;;  %352 = vmatpush.msrb.mxu1 %v109_v55  ;;  %v208_v53 = vld [vmem:[%s1194_s1 + $0x5a8] sm:$0xff]  ;;  %v158_v54 = vld [vmem:[%s1194_s1 + $0x418] sm:$0xff]  ;;  %v175_v55 = vld [vmem:[%s1194_s1 + $0x4a0] sm:$0xff] }
  0x3f   :  { %373 = vmatpush.msrb.mxu2 %v124_v56  ;;  %392 = vmatpush.msrb.mxu3 %v141_v57  ;;  %v190_v56 = vld [vmem:[%s1194_s1 + $0x518] sm:$0xff]  ;;  %v207_v57 = vld [vmem:[%s1194_s1 + $0x5a0] sm:$0xff] }
  0x40   :  { %295 = vmatmul.f32.vlgmr.msra.gmra.mxu2 %v16_v58  ;;  %334 = vmatpush.msrb.mxu0 %v91_v59  ;;  %v157_v58 = vld [vmem:[%s1194_s1 + $0x410] sm:$0xff]  ;;  %v174_v59 = vld [vmem:[%s1194_s1 + $0x498] sm:$0xff] }
  0x41   :  { %353 = vmatpush.msrb.mxu1 %v108_v60  ;;  %374 = vmatpush.msrb.mxu2 %v123_v61  ;;  %v189_v60 = vld [vmem:[%s1194_s1 + $0x510] sm:$0xff]  ;;  %v206_v61 = vld [vmem:[%s1194_s1 + $0x598] sm:$0xff] }
  0x42   :  { %393 = vmatpush.msrb.mxu3 %v140_v62  ;;  %255 = vmatmul.f32.vlgmr.msra.gmra.mxu0 %v14_v63  ;;  %v156_v62 = vld [vmem:[%s1194_s1 + $0x408] sm:$0xff]  ;;  %v173_v63 = vld [vmem:[%s1194_s1 + $0x490] sm:$0xff] }
  0x43   :  { %315 = vmatmul.f32.vlgmr.msra.gmra.mxu3 %v17_v0  ;;  %399 = vmatpush.msra.mxu0 %v170_v1  ;;  %v188_v0 = vld [vmem:[%s1194_s1 + $0x508] sm:$0xff]  ;;  %v205_v1 = vld [vmem:[%s1194_s1 + $0x590] sm:$0xff] }
  0x44   :  { %439 = vmatpush.msra.mxu2 %v202_v2  ;;  %354 = vmatpush.msrb.mxu1 %v107_v3  ;;  %v155_v2 = vld [vmem:[%s1194_s1 + $0x400] sm:$0xff]  ;;  %v172_v3 = vld [vmem:[%s1194_s1 + $0x488] sm:$0xff] }
  0x45   :  { %394 = vmatpush.msrb.mxu3 %v139_v4  ;;  %275 = vmatmul.f32.vlgmr.msra.gmra.mxu1 %v15_v5  ;;  %v187_v4 = vld [vmem:[%s1194_s1 + $0x500] sm:$0xff]  ;;  %v204_v5 = vld [vmem:[%s1194_s1 + $0x588] sm:$0xff] }
  0x46   :  { %400 = vmatpush.msra.mxu0 %v169_v6  ;;  %419 = vmatpush.msra.mxu1 %v186_v7  ;;  %v22_v6 = vld [vmem:[%s1195_s0 + $0x40] sm:$0xff]  ;;  %v24_v7 = vld [vmem:[%s1195_s0 + $0x50] sm:$0xff] }
  0x47   :  { %440 = vmatpush.msra.mxu2 %v201_v8  ;;  %459 = vmatpush.msra.mxu3 %v218_v9  ;;  %v234_v8 = vld [vmem:[%s1194_s1 + $0x678] sm:$0xff]  ;;  %v171_v9 = vld [vmem:[%s1194_s1 + $0x480] sm:$0xff] }
  0x48   :  { %401 = vmatpush.msra.mxu0 %v168_v10  ;;  %420 = vmatpush.msra.mxu1 %v185_v11  ;;  %v203_v10 = vld [vmem:[%s1194_s1 + $0x580] sm:$0xff]  ;;  %v23_v11 = vld [vmem:[%s1195_s0 + $0x48] sm:$0xff] }
  0x49   :  { %441 = vmatpush.msra.mxu2 %v200_v12  ;;  %460 = vmatpush.msra.mxu3 %v217_v13  ;;  %v25_v12 = vld [vmem:[%s1195_s0 + $0x58] sm:$0xff]  ;;  %v233_v13 = vld [vmem:[%s1194_s1 + $0x670] sm:$0xff] }
  0x4a   :  { %375 = vmatmul.f32.vlgmr.msrb.gmra.mxu2 %v20_v14  ;;  %402 = vmatpush.msra.mxu0 %v167_v15  ;;  %v232_v14 = vld [vmem:[%s1194_s1 + $0x668] sm:$0xff]  ;;  %v231_v15 = vld [vmem:[%s1194_s1 + $0x660] sm:$0xff] }
  0x4b   :  { %421 = vmatpush.msra.mxu1 %v184_v16  ;;  %442 = vmatpush.msra.mxu2 %v199_v17  ;;  %v230_v16 = vld [vmem:[%s1194_s1 + $0x658] sm:$0xff]  ;;  %v229_v17 = vld [vmem:[%s1194_s1 + $0x650] sm:$0xff] }
  0x4c   :  { %461 = vmatpush.msra.mxu3 %v216_v18  ;;  %335 = vmatmul.f32.vlgmr.msrb.gmra.mxu0 %v18_v19  ;;  %v228_v18 = vld [vmem:[%s1194_s1 + $0x648] sm:$0xff]  ;;  %v227_v19 = vld [vmem:[%s1194_s1 + $0x640] sm:$0xff] }
  0x4d   :  { %395 = vmatmul.f32.vlgmr.msrb.gmra.mxu3 %v21_v20  ;;  %403 = vmatpush.msra.mxu0 %v166_v21  ;;  %v226_v20 = vld [vmem:[%s1194_s1 + $0x638] sm:$0xff]  ;;  %v225_v21 = vld [vmem:[%s1194_s1 + $0x630] sm:$0xff] }
  0x4e   :  { %422 = vmatpush.msra.mxu1 %v183_v22  ;;  %443 = vmatpush.msra.mxu2 %v198_v23  ;;  %v224_v22 = vld [vmem:[%s1194_s1 + $0x628] sm:$0xff]  ;;  %v223_v23 = vld [vmem:[%s1194_s1 + $0x620] sm:$0xff] }
  0x4f   :  { %462 = vmatpush.msra.mxu3 %v215_v24  ;;  %355 = vmatmul.f32.vlgmr.msrb.gmra.mxu1 %v19_v25  ;;  %v222_v24 = vld [vmem:[%s1194_s1 + $0x618] sm:$0xff]  ;;  %v221_v25 = vld [vmem:[%s1194_s1 + $0x610] sm:$0xff] }
  0x50   :  { %404 = vmatpush.msra.mxu0 %v165_v26  ;;  %423 = vmatpush.msra.mxu1 %v182_v27  ;;  %v220_v26 = vld [vmem:[%s1194_s1 + $0x608] sm:$0xff]  ;;  %v219_v27 = vld [vmem:[%s1194_s1 + $0x600] sm:$0xff] }
  0x51   :  { %444 = vmatpush.msra.mxu2 %v197_v28  ;;  %463 = vmatpush.msra.mxu3 %v214_v29  ;;  %v26_v28 = vld [vmem:[%s1195_s0 + $0x60] sm:$0xff] }
  0x52   :  { %405 = vmatpush.msra.mxu0 %v164_v30  ;;  %424 = vmatpush.msra.mxu1 %v181_v31  ;;  %v504_v29 = vld [vmem:[%s1196_s2] ss:$0 sm:$0xff] }
  0x53   :  { %445 = vmatpush.msra.mxu2 %v196_v32  ;;  %464 = vmatpush.msra.mxu3 %v213_v33 }
  0x54   :  { %406 = vmatpush.msra.mxu0 %v163_v34  ;;  %425 = vmatpush.msra.mxu1 %v180_v35 }
  0x55   :  { %446 = vmatpush.msra.mxu2 %v195_v36  ;;  %465 = vmatpush.msra.mxu3 %v212_v37 }
  0x56   :  { %407 = vmatpush.msra.mxu0 %v162_v38  ;;  %426 = vmatpush.msra.mxu1 %v179_v39 }
  0x57   :  { %447 = vmatpush.msra.mxu2 %v194_v40  ;;  %466 = vmatpush.msra.mxu3 %v211_v41 }
  0x58   :  { %408 = vmatpush.msra.mxu0 %v161_v42  ;;  %427 = vmatpush.msra.mxu1 %v178_v43 }
  0x59   :  { %448 = vmatpush.msra.mxu2 %v193_v44  ;;  %467 = vmatpush.msra.mxu3 %v210_v45 }
  0x5a   :  { %409 = vmatpush.msra.mxu0 %v160_v46  ;;  %428 = vmatpush.msra.mxu1 %v177_v47 }
  0x5b   :  { %449 = vmatpush.msra.mxu2 %v192_v48  ;;  %468 = vmatpush.msra.mxu3 %v209_v49 }
  0x5c   :  { %410 = vmatpush.msra.mxu0 %v159_v50  ;;  %429 = vmatpush.msra.mxu1 %v176_v51 }
  0x5d   :  { %450 = vmatpush.msra.mxu2 %v191_v52  ;;  %469 = vmatpush.msra.mxu3 %v208_v53 }
  0x5e   :  { %411 = vmatpush.msra.mxu0 %v158_v54  ;;  %430 = vmatpush.msra.mxu1 %v175_v55 }
  0x5f   :  { %451 = vmatpush.msra.mxu2 %v190_v56  ;;  %470 = vmatpush.msra.mxu3 %v207_v57 }
  0x60   :  { %412 = vmatpush.msra.mxu0 %v157_v58  ;;  %431 = vmatpush.msra.mxu1 %v174_v59 }
  0x61   :  { %452 = vmatpush.msra.mxu2 %v189_v60  ;;  %471 = vmatpush.msra.mxu3 %v206_v61 }
  0x62   :  { %413 = vmatpush.msra.mxu0 %v156_v62  ;;  %432 = vmatpush.msra.mxu1 %v173_v63 }
  0x63   :  { %453 = vmatpush.msra.mxu2 %v188_v0  ;;  %472 = vmatpush.msra.mxu3 %v205_v1 }
  0x64   :  { %414 = vmatpush.msra.mxu0 %v155_v2  ;;  %433 = vmatpush.msra.mxu1 %v172_v3 }
  0x65   :  { %454 = vmatpush.msra.mxu2 %v187_v4  ;;  %473 = vmatpush.msra.mxu3 %v204_v5 }
  0x66   :  { %415 = vmatmul.f32.vlgmr.msra.gmra.mxu0 %v22_v6  ;;  %455 = vmatmul.f32.vlgmr.msra.gmra.mxu2 %v24_v7 }
  0x67   :  { %479 = vmatpush.msrb.mxu0 %v234_v8  ;;  %434 = vmatpush.msra.mxu1 %v171_v9 }
  0x68   :  { %474 = vmatpush.msra.mxu3 %v203_v10  ;;  %435 = vmatmul.f32.vlgmr.msra.gmra.mxu1 %v23_v11 }
  0x69   :  { %475 = vmatmul.f32.vlgmr.msra.gmra.mxu3 %v25_v12  ;;  %480 = vmatpush.msrb.mxu0 %v233_v13 }
  0x6b   :  { %481 = vmatpush.msrb.mxu0 %v232_v14 }
  0x6d   :  { %482 = vmatpush.msrb.mxu0 %v231_v15 }
  0x6f   :  { %483 = vmatpush.msrb.mxu0 %v230_v16 }
  0x71   :  { %484 = vmatpush.msrb.mxu0 %v229_v17 }
  0x73   :  { %485 = vmatpush.msrb.mxu0 %v228_v18 }
  0x75   :  { %486 = vmatpush.msrb.mxu0 %v227_v19 }
  0x77   :  { %487 = vmatpush.msrb.mxu0 %v226_v20 }
  0x79   :  { %488 = vmatpush.msrb.mxu0 %v225_v21 }
  0x7b   :  { %489 = vmatpush.msrb.mxu0 %v224_v22 }
  0x7d   :  { %490 = vmatpush.msrb.mxu0 %v223_v23 }
  0x7f   :  { %491 = vmatpush.msrb.mxu0 %v222_v24 }
  0x81   :  { %492 = vmatpush.msrb.mxu0 %v221_v25 }
  0x83   :  { %493 = vmatpush.msrb.mxu0 %v220_v26 }
  0x85   :  { %494 = vmatpush.msrb.mxu0 %v219_v27 }
  0x86   :  { %495 = vmatmul.f32.vlgmr.msrb.gmra.mxu0 %v26_v28 }
  0xbf   :  { %v256_v30 = vpop.f32.mrf.mxu0 }
  0xc0   :  { %v257_v31 = vadd.f32 %v504_v29, %v256_v30 }
  0xc2   :  { %v276_v32 = vpop.f32.mrf.mxu1 }
  0xc3   :  { %v277_v33 = vadd.f32 %v276_v32, %v257_v31  ;;  %v296_v34 = vpop.f32.mrf.mxu2 }
  0xc5   :  { %v297_v35 = vadd.f32 %v296_v34, %v277_v33 }
  0xc6   :  { %v316_v36 = vpop.f32.mrf.mxu3 }
  0xc7   :  { %v317_v37 = vadd.f32 %v316_v36, %v297_v35 }
  0xc9   :  { %v336_v38 = vpop.f32.mrf.mxu0 }
  0xca   :  { %v337_v39 = vadd.f32 %v336_v38, %v317_v37 }
  0xcc   :  { %v356_v40 = vpop.f32.mrf.mxu1 }
  0xcd   :  { %v357_v41 = vadd.f32 %v356_v40, %v337_v39  ;;  %v376_v42 = vpop.f32.mrf.mxu2 }
  0xcf   :  { %v377_v43 = vadd.f32 %v376_v42, %v357_v41 }
  0xd0   :  { %v396_v44 = vpop.f32.mrf.mxu3 }
  0xd1   :  { %v397_v46 = vadd.f32 %v396_v44, %v377_v43 }
  0xe3   :  { %v416_v45 = vpop.f32.mrf.mxu0 }
  0xe4   :  { %v417_v47 = vadd.f32 %v416_v45, %v397_v46 }
  0xe5   :  { %v436_v48 = vpop.f32.mrf.mxu1 }
  0xe6   :  { %v437_v50 = vadd.f32 %v436_v48, %v417_v47 }
  0xe9   :  { %v456_v49 = vpop.f32.mrf.mxu2 }
  0xea   :  { %v457_v51 = vadd.f32 %v456_v49, %v437_v50 }
  0xec   :  { %v476_v52 = vpop.f32.mrf.mxu3 }
  0xed   :  { %v477_v53 = vadd.f32 %v476_v52, %v457_v51 }
 0x103   :  { %v496_v54 = vpop.f32.mrf.mxu0 }
 0x104   :  { %v497_v55 = vadd.f32 %v496_v54, %v477_v53 }
 0x106   :  { %499 = vst [vmem:[%s1197_s3] sm:$0xff] %v497_v55 }

</bundles_post_ra>
